<compile_context>
chip_gen: v6e
topology: v6e:2x2x1
jax: 0.10.0
libtpu: 0.0.40
codegen_flags: <defaults>
</compile_context>

<pallas_src>
import math
import jax
import jax.numpy as jnp
from jax.experimental import pallas as pl
from jax.experimental.pallas import tpu as pltpu


def _softplus(x):
    # numerically stable softplus: max(x,0) + log1p(exp(-|x|))
    return jnp.maximum(x, 0.0) + jnp.log1p(jnp.exp(-jnp.abs(x)))


def _round_up(x, m):
    return ((x + m - 1) // m) * m


def actor_kernel(state_ref, eps_ref,
                 w1_ref, b1_ref, w2_ref, b2_ref,
                 wh_ref, bh_ref,
                 out_ref):
    A = eps_ref.shape[1]          # action_dim
    TB, P = out_ref.shape         # batch tile, padded (lane-dense) output width

    # --- a_net: Linear -> ReLU -> Linear -> ReLU (bf16 matmuls, f32 accumulate) ---
    x = state_ref[...].astype(jnp.bfloat16)                          # (TB, S)
    h1 = jnp.dot(x, w1_ref[...], preferred_element_type=jnp.float32) + b1_ref[...]
    h1 = jnp.maximum(h1, 0.0).astype(jnp.bfloat16)
    h2 = jnp.dot(h1, w2_ref[...], preferred_element_type=jnp.float32) + b2_ref[...]
    h2 = jnp.maximum(h2, 0.0).astype(jnp.bfloat16)

    # --- fused heads: one (H, 2A) matmul, then static lane slices ---
    head = jnp.dot(h2, wh_ref[...], preferred_element_type=jnp.float32) + bh_ref[...]
    mu = head[:, :A]                                                  # (TB, A)
    log_std = jnp.clip(head[:, A:], -20.0, 2.0)
    std = jnp.exp(log_std)

    # --- reparameterized sample + tanh squash ---
    eps = eps_ref[...]                                                # (TB, A)
    u = mu + std * eps
    a = jnp.tanh(u)

    # --- log prob, single fused reduction ---
    #   sum(Normal.log_prob(u)) - sum(2*(log2 - u - softplus(-2u)))
    # = sum(2*(u + sp) - 0.5*eps^2 - log_std)  -  A*(0.5*log(2pi) + 2*log2)
    sp = _softplus(-2.0 * u)
    term = 2.0 * (u + sp) - 0.5 * (eps * eps) - log_std
    const = -float(A) * (0.5 * math.log(2.0 * math.pi) + 2.0 * math.log(2.0))
    logp = jnp.sum(term, axis=1, keepdims=True) + const               # (TB, 1)

    # --- lane-dense writeback: one unmasked (TB, 128) store ---
    # lanes [0, A) = action, lane A = logp, remaining lanes = 0.
    pad = jnp.zeros((TB, P - A - 1), dtype=jnp.float32)
    out_ref[...] = jnp.concatenate([a, logp, pad], axis=1)


def actor_forward(state, eps, packed, *, tile_b=1024):
    """state: (B, state_dim) f32, eps: (B, action_dim) f32 standard normal.

    packed: dict from pack_params() with bf16 weights and fused head.
    Returns (action (B, A) f32, logp (B, 1) f32).
    """
    B, S = state.shape
    A2 = packed["whead"].shape[1]
    A = A2 // 2
    H1 = packed["w1"].shape[1]
    H2 = packed["w2"].shape[1]
    P = _round_up(A + 1, 128)      # lane-dense packed output width

    # --- tiling policy: minimize grid steps first, then minimize padding ---
    n_steps = max(1, pl.cdiv(B, tile_b))
    # v7x has 2 TensorCores; force an even >= 2 step count when each core gets
    # enough rows to amortize the ~0.35us per-step overhead. Harmless on
    # v5e/v6e (1 TC).
    if B >= 256:
        n_steps = max(n_steps, 2)
        n_steps += n_steps % 2
    tb = _round_up(pl.cdiv(B, n_steps), 16)   # multiple of 16: bf16 sublane packing
    b_pad = n_steps * tb

    if b_pad != B:
        state = jnp.pad(state, ((0, b_pad - B), (0, 0)))
        eps = jnp.pad(eps, ((0, b_pad - B), (0, 0)))

    batch_spec = lambda d: pl.BlockSpec((tb, d), lambda i: (i, 0))
    resident = lambda shape: pl.BlockSpec(shape, lambda i: (0, 0))

    # Explicit scoped-VMEM limit (v5e default 16 MiB / v7x 32 MiB can bite when
    # hid_shape or tile_b is scaled up): weights + double-buffered I/O tiles +
    # activation headroom, clamped to a sane range.
    weight_bytes = 2 * (S * H1 + H1 * H2 + H2 * A2) + 4 * (H1 + H2 + A2)
    tile_bytes = 4 * tb * (S + A + P) + 4 * tb * max(H1, H2, A2)
    vmem_limit = int(min(max(2 * (weight_bytes + 2 * tile_bytes) + (8 << 20),
                             32 << 20), 128 << 20))

    out = pl.pallas_call(
        actor_kernel,
        grid=(n_steps,),
        in_specs=[
            batch_spec(S),                 # state (tiled over batch)
            batch_spec(A),                 # eps   (tiled over batch)
            resident((S, H1)),             # w1    (VMEM-resident, never re-DMA'd)
            resident((1, H1)),             # b1
            resident((H1, H2)),            # w2
            resident((1, H2)),             # b2
            resident((H2, A2)),            # whead = [wmu | wls]
            resident((1, A2)),             # bhead = [bmu | bls]
        ],
        out_specs=pl.BlockSpec((tb, P), lambda i: (i, 0)),   # packed a|logp slab
        out_shape=jax.ShapeDtypeStruct((b_pad, P), jnp.float32),
        compiler_params=pltpu.CompilerParams(
            dimension_semantics=("parallel",),
            vmem_limit_bytes=vmem_limit),
    )(state, eps,
      packed["w1"], packed["b1"],
      packed["w2"], packed["b2"],
      packed["whead"], packed["bhead"])

    a = out[:B, :A]
    logp = out[:B, A:A + 1]
    return a, logp


def init_params(key, state_dim, hid_shape, action_dim):
    """Deterministic PyTorch-style uniform(-1/sqrt(fan_in), 1/sqrt(fan_in)) init (f32)."""
    dims = [state_dim] + list(hid_shape)
    keys = jax.random.split(key, 8)
    params = {}

    def lin(kw, kb, fan_in, fan_out):
        bound = 1.0 / math.sqrt(fan_in)
        w = jax.random.uniform(kw, (fan_in, fan_out), jnp.float32, -bound, bound)
        b = jax.random.uniform(kb, (1, fan_out), jnp.float32, -bound, bound)
        return w, b

    params["w1"], params["b1"] = lin(keys[0], keys[1], dims[0], dims[1])
    params["w2"], params["b2"] = lin(keys[2], keys[3], dims[1], dims[2])
    params["wmu"], params["bmu"] = lin(keys[4], keys[5], dims[2], action_dim)
    params["wls"], params["bls"] = lin(keys[6], keys[7], dims[2], action_dim)
    return params


def pack_params(params):
    """Fuse the mu/log_std heads and cast weights to bf16 (biases stay f32)."""
    whead = jnp.concatenate([params["wmu"], params["wls"]], axis=1)
    bhead = jnp.concatenate([params["bmu"], params["bls"]], axis=1)
    return {
        "w1": params["w1"].astype(jnp.bfloat16), "b1": params["b1"],
        "w2": params["w2"].astype(jnp.bfloat16), "b2": params["b2"],
        "whead": whead.astype(jnp.bfloat16), "bhead": bhead,
    }


if __name__ == "__main__":
    B, state_dim, action_dim = 256, 16, 8
    hid_shape = (32, 32)

    key = jax.random.PRNGKey(0)
    k_state, k_eps, k_params = jax.random.split(key, 3)

    state = jax.random.normal(k_state, (B, state_dim), jnp.float32)
    eps = jax.random.normal(k_eps, (B, action_dim), jnp.float32)
    params = init_params(k_params, state_dim, hid_shape, action_dim)
    packed = pack_params(params)

    # tile_b=128 -> 2 grid steps at B=256 (exercises the batch pipeline and,
    # on v7x, the 2-TensorCore split of the "parallel" batch axis).
    a, logp = actor_forward(state, eps, packed, tile_b=128)
    jax.block_until_ready((a, logp))

    # pure-JAX reference with identical bf16 weight / activation casts
    def ref(state, eps, p):
        w1 = p["w1"].astype(jnp.bfloat16)
        w2 = p["w2"].astype(jnp.bfloat16)
        wmu = p["wmu"].astype(jnp.bfloat16)
        wls = p["wls"].astype(jnp.bfloat16)
        h1 = jnp.dot(state.astype(jnp.bfloat16), w1,
                     preferred_element_type=jnp.float32) + p["b1"]
        h1 = jnp.maximum(h1, 0.0).astype(jnp.bfloat16)
        h2 = jnp.dot(h1, w2, preferred_element_type=jnp.float32) + p["b2"]
        h2 = jnp.maximum(h2, 0.0).astype(jnp.bfloat16)
        mu = jnp.dot(h2, wmu, preferred_element_type=jnp.float32) + p["bmu"]
        log_std = jnp.dot(h2, wls, preferred_element_type=jnp.float32) + p["bls"]
        log_std = jnp.clip(log_std, -20.0, 2.0)
        std = jnp.exp(log_std)
        u = mu + std * eps
        a = jnp.tanh(u)
        logp_n = -0.5 * eps * eps - log_std - 0.5 * math.log(2 * math.pi)
        corr = 2.0 * (math.log(2.0) - u - jax.nn.softplus(-2.0 * u))
        logp = jnp.sum(logp_n, 1, keepdims=True) - jnp.sum(corr, 1, keepdims=True)
        return a, logp

    a_ref, logp_ref = ref(state, eps, params)
    assert a.shape == (B, action_dim) and logp.shape == (B, 1)
    assert jnp.allclose(a, a_ref, atol=1e-4), "action mismatch"
    assert jnp.allclose(logp, logp_ref, atol=1e-3), "logp mismatch"
    print("KERNEL_OK")
</pallas_src>

<mosaic_0001>
module attributes {stable_mosaic.version = 11 : i64} {
  func.func @actor_kernel(%arg0: i32, %arg1: memref<128x16xf32, #tpu.memory_space<vmem>>, %arg2: memref<128x8xf32, #tpu.memory_space<vmem>>, %arg3: memref<16x32xbf16, #tpu.memory_space<vmem>>, %arg4: memref<1x32xf32, #tpu.memory_space<vmem>>, %arg5: memref<32x32xbf16, #tpu.memory_space<vmem>>, %arg6: memref<1x32xf32, #tpu.memory_space<vmem>>, %arg7: memref<32x16xbf16, #tpu.memory_space<vmem>>, %arg8: memref<1x16xf32, #tpu.memory_space<vmem>>, %arg9: memref<128x128xf32, #tpu.memory_space<vmem>>) attributes {dimension_semantics = [#tpu.dimension_semantics<parallel>], iteration_bounds = array<i64: 2>, scalar_prefetch = 0 : i64, scratch_operands = 0 : i64, tpu.core_type = #tpu.core_type<tc>, window_params = [{transform_indices = @transform_0, window_bounds = array<i64: 128, 16>}, {transform_indices = @transform_1, window_bounds = array<i64: 128, 8>}, {pipeline_mode = #tpu.pipeline_mode<synchronous>, transform_indices = @transform_2, window_bounds = array<i64: 16, 32>}, {pipeline_mode = #tpu.pipeline_mode<synchronous>, transform_indices = @transform_3, window_bounds = array<i64: 1, 32>}, {pipeline_mode = #tpu.pipeline_mode<synchronous>, transform_indices = @transform_4, window_bounds = array<i64: 32, 32>}, {pipeline_mode = #tpu.pipeline_mode<synchronous>, transform_indices = @transform_5, window_bounds = array<i64: 1, 32>}, {pipeline_mode = #tpu.pipeline_mode<synchronous>, transform_indices = @transform_6, window_bounds = array<i64: 32, 16>}, {pipeline_mode = #tpu.pipeline_mode<synchronous>, transform_indices = @transform_7, window_bounds = array<i64: 1, 16>}, {transform_indices = @transform_8, window_bounds = array<i64: 128, 128>}]} {
    %c0 = arith.constant 0 : index
    %c0_0 = arith.constant 0 : index
    %0 = vector.load %arg1[%c0, %c0_0] : memref<128x16xf32, #tpu.memory_space<vmem>>, vector<128x16xf32>
    %1 = arith.truncf %0 : vector<128x16xf32> to vector<128x16xbf16>
    %c0_1 = arith.constant 0 : index
    %c0_2 = arith.constant 0 : index
    %2 = vector.load %arg3[%c0_1, %c0_2] : memref<16x32xbf16, #tpu.memory_space<vmem>>, vector<16x32xbf16>
    %cst = arith.constant dense<0.000000e+00> : vector<128x32xf32>
    %3 = tpu.matmul %1, %2, %cst {dimension_numbers = #tpu.dot_dimension_numbers<[1], [0], [0], [1], [0, 0, 1, 1], [], []>} : vector<128x16xbf16>, vector<16x32xbf16>, vector<128x32xf32> -> vector<128x32xf32>
    %c0_3 = arith.constant 0 : index
    %c0_4 = arith.constant 0 : index
    %4 = vector.load %arg4[%c0_3, %c0_4] : memref<1x32xf32, #tpu.memory_space<vmem>>, vector<1x32xf32>
    %5 = vector.broadcast %4 : vector<1x32xf32> to vector<128x32xf32>
    %6 = arith.addf %3, %5 : vector<128x32xf32>
    %cst_5 = arith.constant 0.000000e+00 : f32
    %7 = vector.broadcast %cst_5 : f32 to vector<128x32xf32>
    %8 = arith.maximumf %6, %7 : vector<128x32xf32>
    %9 = arith.truncf %8 : vector<128x32xf32> to vector<128x32xbf16>
    %c0_6 = arith.constant 0 : index
    %c0_7 = arith.constant 0 : index
    %10 = vector.load %arg5[%c0_6, %c0_7] : memref<32x32xbf16, #tpu.memory_space<vmem>>, vector<32x32xbf16>
    %cst_8 = arith.constant dense<0.000000e+00> : vector<128x32xf32>
    %11 = tpu.matmul %9, %10, %cst_8 {dimension_numbers = #tpu.dot_dimension_numbers<[1], [0], [0], [1], [0, 0, 1, 1], [], []>} : vector<128x32xbf16>, vector<32x32xbf16>, vector<128x32xf32> -> vector<128x32xf32>
    %c0_9 = arith.constant 0 : index
    %c0_10 = arith.constant 0 : index
    %12 = vector.load %arg6[%c0_9, %c0_10] : memref<1x32xf32, #tpu.memory_space<vmem>>, vector<1x32xf32>
    %13 = vector.broadcast %12 : vector<1x32xf32> to vector<128x32xf32>
    %14 = arith.addf %11, %13 : vector<128x32xf32>
    %cst_11 = arith.constant 0.000000e+00 : f32
    %15 = vector.broadcast %cst_11 : f32 to vector<128x32xf32>
    %16 = arith.maximumf %14, %15 : vector<128x32xf32>
    %17 = arith.truncf %16 : vector<128x32xf32> to vector<128x32xbf16>
    %c0_12 = arith.constant 0 : index
    %c0_13 = arith.constant 0 : index
    %18 = vector.load %arg7[%c0_12, %c0_13] : memref<32x16xbf16, #tpu.memory_space<vmem>>, vector<32x16xbf16>
    %cst_14 = arith.constant dense<0.000000e+00> : vector<128x16xf32>
    %19 = tpu.matmul %17, %18, %cst_14 {dimension_numbers = #tpu.dot_dimension_numbers<[1], [0], [0], [1], [0, 0, 1, 1], [], []>} : vector<128x32xbf16>, vector<32x16xbf16>, vector<128x16xf32> -> vector<128x16xf32>
    %c0_15 = arith.constant 0 : index
    %c0_16 = arith.constant 0 : index
    %20 = vector.load %arg8[%c0_15, %c0_16] : memref<1x16xf32, #tpu.memory_space<vmem>>, vector<1x16xf32>
    %21 = vector.broadcast %20 : vector<1x16xf32> to vector<128x16xf32>
    %22 = arith.addf %19, %21 : vector<128x16xf32>
    %23 = vector.extract_strided_slice %22 {offsets = [0, 0], sizes = [128, 8], strides = [1, 1]} : vector<128x16xf32> to vector<128x8xf32>
    %24 = vector.extract_strided_slice %22 {offsets = [0, 8], sizes = [128, 8], strides = [1, 1]} : vector<128x16xf32> to vector<128x8xf32>
    %cst_17 = arith.constant -2.000000e+01 : f32
    %cst_18 = arith.constant 2.000000e+00 : f32
    %25 = vector.broadcast %cst_17 : f32 to vector<128x8xf32>
    %26 = arith.maximumf %25, %24 : vector<128x8xf32>
    %27 = vector.broadcast %cst_18 : f32 to vector<128x8xf32>
    %28 = arith.minimumf %27, %26 : vector<128x8xf32>
    %29 = math.exp %28 : vector<128x8xf32>
    %c0_19 = arith.constant 0 : index
    %c0_20 = arith.constant 0 : index
    %30 = vector.load %arg2[%c0_19, %c0_20] : memref<128x8xf32, #tpu.memory_space<vmem>>, vector<128x8xf32>
    %31 = arith.mulf %29, %30 : vector<128x8xf32>
    %32 = arith.addf %23, %31 : vector<128x8xf32>
    %33 = math.tanh %32 : vector<128x8xf32>
    %cst_21 = arith.constant -2.000000e+00 : f32
    %34 = vector.broadcast %cst_21 : f32 to vector<128x8xf32>
    %35 = arith.mulf %34, %32 : vector<128x8xf32>
    %cst_22 = arith.constant 0.000000e+00 : f32
    %36 = vector.broadcast %cst_22 : f32 to vector<128x8xf32>
    %37 = arith.maximumf %35, %36 : vector<128x8xf32>
    %38 = math.absf %35 : vector<128x8xf32>
    %cst_23 = arith.constant 0.000000e+00 : f32
    %39 = vector.broadcast %cst_23 : f32 to vector<128x8xf32>
    %40 = arith.subf %39, %38 : vector<128x8xf32>
    %41 = math.exp %40 : vector<128x8xf32>
    %42 = math.log1p %41 : vector<128x8xf32>
    %43 = arith.addf %37, %42 : vector<128x8xf32>
    %44 = arith.addf %32, %43 : vector<128x8xf32>
    %cst_24 = arith.constant 2.000000e+00 : f32
    %45 = vector.broadcast %cst_24 : f32 to vector<128x8xf32>
    %46 = arith.mulf %45, %44 : vector<128x8xf32>
    %47 = arith.mulf %30, %30 : vector<128x8xf32>
    %cst_25 = arith.constant 5.000000e-01 : f32
    %48 = vector.broadcast %cst_25 : f32 to vector<128x8xf32>
    %49 = arith.mulf %48, %47 : vector<128x8xf32>
    %50 = arith.subf %46, %49 : vector<128x8xf32>
    %51 = arith.subf %50, %28 : vector<128x8xf32>
    %cst_26 = arith.constant dense<0.000000e+00> : vector<128xf32>
    %52 = vector.multi_reduction <add>, %51, %cst_26 [1] : vector<128x8xf32> to vector<128xf32>
    %53 = vector.shape_cast %52 : vector<128xf32> to vector<128x1xf32>
    %cst_27 = arith.constant -18.441864 : f32
    %54 = vector.broadcast %cst_27 : f32 to vector<128x1xf32>
    %55 = arith.addf %53, %54 : vector<128x1xf32>
    %cst_28 = arith.constant 0.000000e+00 : f32
    %56 = vector.broadcast %cst_28 : f32 to vector<128x119xf32>
    %57 = tpu.concatenate %33, %55, %56 in 1 : vector<128x8xf32>, vector<128x1xf32>, vector<128x119xf32> -> vector<128x128xf32>
    %c0_29 = arith.constant 0 : index
    %c0_30 = arith.constant 0 : index
    %58 = vector.load %arg9[%c0_29, %c0_30] : memref<128x128xf32, #tpu.memory_space<vmem>>, vector<128x128xf32>
    tpu.vector_store %arg9[%c0_29, %c0_30], %57 {strides = array<i32>} : memref<128x128xf32, #tpu.memory_space<vmem>>, vector<128x128xf32>,
    return
  }
  func.func @transform_0(%arg0: i32) -> (i32, i32) {
    %c0_i32 = arith.constant 0 : i32
    %c0_i32_0 = arith.constant 0 : i32
    return %arg0, %c0_i32 : i32, i32
  }
  func.func @transform_1(%arg0: i32) -> (i32, i32) {
    %c0_i32 = arith.constant 0 : i32
    %c0_i32_0 = arith.constant 0 : i32
    return %arg0, %c0_i32 : i32, i32
  }
  func.func @transform_2(%arg0: i32) -> (i32, i32) {
    %c0_i32 = arith.constant 0 : i32
    %c0_i32_0 = arith.constant 0 : i32
    %c0_i32_1 = arith.constant 0 : i32
    return %c0_i32, %c0_i32_0 : i32, i32
  }
  func.func @transform_3(%arg0: i32) -> (i32, i32) {
    %c0_i32 = arith.constant 0 : i32
    %c0_i32_0 = arith.constant 0 : i32
    %c0_i32_1 = arith.constant 0 : i32
    return %c0_i32, %c0_i32_0 : i32, i32
  }
  func.func @transform_4(%arg0: i32) -> (i32, i32) {
    %c0_i32 = arith.constant 0 : i32
    %c0_i32_0 = arith.constant 0 : i32
    %c0_i32_1 = arith.constant 0 : i32
    return %c0_i32, %c0_i32_0 : i32, i32
  }
  func.func @transform_5(%arg0: i32) -> (i32, i32) {
    %c0_i32 = arith.constant 0 : i32
    %c0_i32_0 = arith.constant 0 : i32
    %c0_i32_1 = arith.constant 0 : i32
    return %c0_i32, %c0_i32_0 : i32, i32
  }
  func.func @transform_6(%arg0: i32) -> (i32, i32) {
    %c0_i32 = arith.constant 0 : i32
    %c0_i32_0 = arith.constant 0 : i32
    %c0_i32_1 = arith.constant 0 : i32
    return %c0_i32, %c0_i32_0 : i32, i32
  }
  func.func @transform_7(%arg0: i32) -> (i32, i32) {
    %c0_i32 = arith.constant 0 : i32
    %c0_i32_0 = arith.constant 0 : i32
    %c0_i32_1 = arith.constant 0 : i32
    return %c0_i32, %c0_i32_0 : i32, i32
  }
  func.func @transform_8(%arg0: i32) -> (i32, i32) {
    %c0_i32 = arith.constant 0 : i32
    %c0_i32_0 = arith.constant 0 : i32
    return %arg0, %c0_i32 : i32, i32
  }
}

</mosaic_0001>

<bundles_post_ra>
// kernel: tpu_custom_call.1
= control target key start
LH: loop header
LB: loop body
LE: loop exit
PB: predicated region body
PF: predicated region fallthrough
CT: control target
= control target key end

     0   :  { %13 = vsyncpa [#allocation3], 0  ;;  %s3006_s0 = inlined_call_operand.vmem [shape: f32[256,16], index: 0, kind: input, shape index: {}]   ;;  %s3007_s1 = inlined_call_operand.vmem [shape: f32[256,8], index: 1, kind: input, shape index: {}]   ;;  %s3008_s2 = inlined_call_operand.vmem [shape: bf16[16,32], index: 2, kind: input, shape index: {}]   ;;  %s3009_s3 = inlined_call_operand.vmem [shape: f32[1,32], index: 3, kind: input, shape index: {}]   ;;  %s3010_s4 = inlined_call_operand.vmem [shape: bf16[32,32], index: 4, kind: input, shape index: {}]   ;;  %s3011_s5 = inlined_call_operand.vmem [shape: f32[1,32], index: 5, kind: input, shape index: {}]   ;;  %s3012_s6 = inlined_call_operand.vmem [shape: bf16[32,16], index: 6, kind: input, shape index: {}]   ;;  %s3013_s7 = inlined_call_operand.vmem [shape: f32[1,16], index: 7, kind: input, shape index: {}]   ;;  %s3014_s8 = inlined_call_operand.hbm [shape: f32[256,128], index: 8, kind: output, shape index: {}]  }
   0x1   :  { %15 = vsyncpa [#allocation3 + $0x1], 0  ;;  %s2128_s27 = smov 0   ;;  %s2130_s28 = smov 0  }
   0x2   :  { %s2132_s29 = smov 0   ;;  %s2134_s30 = smov 0  }
   0x3 LB: > { %s2149_s9 = sadd.s32 4294967295, %s2077_s30   ;;  %s1702_s10 = sadd.s32 4294967294, %s2077_s30   ;;  %s2077_s30 = sphi %s2134_s30, %s3100_s30   ;;  %s2073_s29 = sphi %s2132_s29, %s3099_s29   ;;  %s2069_s28 = sphi %s2130_s28, %s3098_s28   ;;  %s2065_s27 = sphi %s2128_s27, %s3097_s27  }
   0x4   : > { %s2153_s11 = sadd.s32 1, %s2077_s30   ;;  %s206_s12 = sadd.s32 1, %s2073_s29 }
   0x5   : > { %s203_s13 = ssub.s32 %s2077_s30, %s2153_s11  ;;  %p216_p0 = scmp.ne.s32.totalorder %s2073_s29, %s2069_s28 }
   0x6   : > { %p204_p1 = scmp.eq.s32.totalorder %s203_s13, 0  ;;  %p217_p2 = scmp.eq.s32.totalorder %s2149_s9, 1 }
   0x7   : > { %p222_p3 = scmp.ne.s32.totalorder %s2069_s28, %s2065_s27  ;;  %p223_p4 = scmp.eq.s32.totalorder %s1702_s10, 1 }
   0x8   : > { %s2164_s14 = scalar_select %p204_p1, %s2073_s29, %s206_s12  }
   0x9   : > { %p2166_p5 = por %p217_p2, %p216_p0  ;;  %p2170_p6 = por %p223_p4, %p222_p3 }
   0xa   : > { %p1705_p7 = scmp.ge.s32.totalorder %s2077_s30, 1  ;;  %p277_p8 = scmp.lt.s32.totalorder %s2077_s30, 3 }
   0xc   : > { %p278_p9 = pnand %p1705_p7, %p277_p8 }
   0xe   : > { %281 = sbr.rel (%p278_p9) target bundleno = 1042 (0x412), region = 52 }
  0x13   : > { %v1880_v0 = vld [vmem:[%s3008_s2] sm:$0xff]   ;;  %s1707_s19 = sshll.u32 %s2149_s9, 4  ;;  %v1881_v1 = vld [vmem:[%s3010_s4 + $0x8] sm:$0xff]   ;;  %vm369_vm0 = vcmask 130048   ;;  %vm538_vm1 = vcmask 261120   ;;  %s2079_s26 = smov 8  }
  0x14   : > { %p317_p10 = scmp.lt.s32.totalorder %s1707_s19, 31  ;;  %1778 = vmatprep.subr.bf16.mxu0 %v1880_v0  ;;  %1836 = vmatprep.subr.bf16.mxu1 %v1880_v0  ;;  %v1882_v26 = vld [vmem:[%s3010_s4] sm:$0xff]   ;;  %v1883_v27 = vld [vmem:[%s3012_s6 + $0x8] sm:$0xff]   ;;  %s2080_s13 = smov 120   ;;  %vm1500_vm8 = vcmask 64512  }
  0x15   : > { %1779 = vmatpush3.bf16.msra.mxu0 %v1880_v0  ;;  %1837 = vmatpush3.bf16.msra.mxu1 %v1880_v0  ;;  %v1711_v30 = vld [vmem:[%s3009_s3] ss:$0 sm:$0xff]  ;;  %s313_s17 = sand.u32 1, %s2069_s28   ;;  %s1748_s21 = sshll.u32 %s2149_s9, 11 }
  0x16   : > { %s3102_s19 = smov (!%p317_p10, %s1707_s19), 31  ;;  %1796 = vmatprep.subr.bf16.mxu1 %v1881_v1  ;;  %1816 = vmatprep.subr.bf16.mxu0 %v1883_v27  ;;  %s1706_s18 = sshll.u32 %s313_s17, 7 }
  0x17   : > { %s1708_s22 = sshll.u32 %s3102_s19, 3  ;;  %s2895_s20 = scalar_lea.vmem [#allocation2], %s1706_s18 }
  0x18   : > { %s320_s25 = scalar_lea.vmem %s3006_s0, %s1708_s22  ;;  %s1628_s23 = sshll.u32 %s2895_s20, 4  ;;  %s2959_s23 = int_to_ptr.vmem [resolvable:$true] %s1628_s23 }
  0x19   : > { %v330_v2 = vld [vmem:[%s320_s25] sm:$0xff]  ;;  %v331_v3 = vld [vmem:[%s320_s25 + $0x8] sm:$0xff]  ;;  %v332_v4 = vld [vmem:[%s320_s25 + $0x10] sm:$0xff]  ;;  %s2956_s19 = scalar_lea.hbm %s3014_s8, %s1748_s21  ;;  %s2965_s9 = scalar_lea.sflag [#allocation3], %s313_s17 }
  0x1a   : > { %v346_v5 = vpack.c.bf16 %v331_v3, %v330_v2  ;;  %v333_v6 = vld [vmem:[%s320_s25 + $0x18] sm:$0xff]  ;;  %v334_v7 = vld [vmem:[%s320_s25 + $0x20] sm:$0xff]  ;;  %v335_v8 = vld [vmem:[%s320_s25 + $0x28] sm:$0xff]  ;;  %s2081_s10 = smov [#allocation2]  }
  0x1b   : > { %v347_v9 = vpack.c.bf16 %v333_v6, %v332_v4  ;;  %v348_v10 = vpack.c.bf16 %v335_v8, %v334_v7  ;;  %v338_v11 = vld [vmem:[%s320_s25 + $0x40] sm:$0xff]  ;;  %v339_v12 = vld [vmem:[%s320_s25 + $0x48] sm:$0xff]  ;;  %v340_v13 = vld [vmem:[%s320_s25 + $0x50] sm:$0xff]  ;;  %s2021_s12 = sshll.u32 %s2081_s10, 4  ;;  %s2022_s12 = int_to_ptr.vmem [resolvable:$false] %s2021_s12 }
  0x1c   : > { %1780 = vmatprep.mubr.msk.bf16.mxu0 %vm369_vm0, %v346_v5  ;;  %v341_v14 = vld [vmem:[%s320_s25 + $0x58] sm:$0xff]  ;;  %v350_v15 = vpack.c.bf16 %v339_v12, %v338_v11  ;;  %v342_v17 = vld [vmem:[%s320_s25 + $0x60] sm:$0xff]  ;;  %v343_v18 = vld [vmem:[%s320_s25 + $0x68] sm:$0xff]  ;;  %p2024_p0 = scmp.lt.s32.totalorder %s2959_s23, %s2022_s12 }
  0x1d   : > { %1781 = vmatmul.mubr.msk.bf16.vlgmr.msra.gmra.mxu0 %vm369_vm0, %v347_v9  ;;  %v351_v16 = vpack.c.bf16 %v341_v14, %v340_v13  ;;  %v336_v19 = vld [vmem:[%s320_s25 + $0x30] sm:$0xff]  ;;  %v337_v20 = vld [vmem:[%s320_s25 + $0x38] sm:$0xff]  ;;  %v352_v21 = vpack.c.bf16 %v343_v18, %v342_v17 }
  0x1e   : > { %1784 = vmatprep.mubr.msk.bf16.mxu0 %vm369_vm0, %v348_v10  ;;  %1788 = vmatprep.mubr.msk.bf16.mxu1 %vm369_vm0, %v350_v15  ;;  %v349_v22 = vpack.c.bf16 %v337_v20, %v336_v19  ;;  %v344_v23 = vld [vmem:[%s320_s25 + $0x70] sm:$0xff]  ;;  %v345_v24 = vld [vmem:[%s320_s25 + $0x78] sm:$0xff]  ;;  %s2224_s25 = scalar_lea.vmem %s3007_s1, %s1708_s22  ;;  %s2017_s22 = scalar_lea.vmem %s2959_s23, 2048 }
  0x1f   : > { %1789 = vmatmul.mubr.msk.bf16.vlgmr.msra.gmra.mxu1 %vm369_vm0, %v351_v16  ;;  %v353_v25 = vpack.c.bf16 %v345_v24, %v344_v23  ;;  %1817 = vmatpush3.bf16.msra.mxu0 %v1883_v27  ;;  %v2230_v23 = vld [vmem:[%s2224_s25 + $0x10] sm:$0xff]  ;;  %v2237_v24 = vld [vmem:[%s2224_s25 + $0x8] sm:$0xff]  ;;  %p2018_p11 = scmp.ne.s32.totalorder %s2959_s23, %s2017_s22 }
  0x20   : > { %1792 = vmatprep.mubr.msk.bf16.mxu1 %vm369_vm0, %v352_v21  ;;  %1797 = vmatpush3.bf16.msra.mxu1 %v1881_v1  ;;  %v1884_v21 = vld [vmem:[%s3012_s6] sm:$0xff]   ;;  %v2250_v27 = vld [vmem:[%s2224_s25 + $0x28] sm:$0xff] }
  0x21   : > { %1798 = vmatprep.subr.bf16.mxu1 %v1882_v26  ;;  %1818 = vmatprep.subr.bf16.mxu0 %v1884_v21  ;;  %p2019_p12 = pnand %p2018_p11, %p2166_p5 }
  0x22   : > { %928 = vrot.lane.b32.xlu1 %v2230_v23, %s2079_s26 }
  0x23   : > { %1819 = vmatpush3.bf16.msra.mxu0 %v1884_v21  ;;  %p2020_p13 = pneg %p2019_p12 }
  0x24   : > { %1799 = vmatpush3.bf16.msra.mxu1 %v1882_v26  ;;  %v2247_v26 = vld [vmem:[%s2224_s25 + $0x20] sm:$0xff] }
  0x25   : > { %1785 = vmatmul.mubr.msk.bf16.gmra.mxu0 %vm369_vm0, %v349_v22  ;;  %v2227_v22 = vld [vmem:[%s2224_s25] sm:$0xff] }
  0x26   : > { %924 = vrot.lane.b32.xlu0 %v2227_v22, %s2079_s26 }
  0x27   : > { %1793 = vmatmul.mubr.msk.bf16.gmra.mxu1 %vm369_vm0, %v353_v25  ;;  %v2240_v25 = vld [vmem:[%s2224_s25 + $0x18] sm:$0xff] }
  0x28   : > { %930 = vrot.lane.b32.xlu1 %v2240_v25, %s2079_s26 }
  0x2a   : > { %926 = vrot.lane.b32.xlu0 %v2237_v24, %s2079_s26 }
  0x2c   : > { %934 = vrot.lane.b32.xlu1 %v2250_v27, %s2079_s26 }
  0x2e   : > { %932 = vrot.lane.b32.xlu0 %v2247_v26, %s2079_s26 }
  0xdd   : > { %v1782_v28 = vpop.f32.mrf.mxu0 }
  0xde   : > { %v437_v36 = vadd.f32 %v1782_v28, %v1711_v30  ;;  %v2257_v28 = vld [vmem:[%s2224_s25 + $0x30] sm:$0xff] }
  0xdf   : > { %v428_v29 = vpop.f32.mrf.mxu0  ;;  %v1790_v31 = vpop.f32.mrf.mxu1  ;;  %936 = vrot.lane.b32.xlu0 %v2257_v28, %s2079_s26 }
  0xe0   : > { %v429_v33 = vadd.f32 %v1711_v30, %v428_v29  ;;  %v493_v45 = vmax.f32 %v437_v36, 0.0  ;;  %v469_v7 = vadd.f32 %v1790_v31, %v1711_v30  ;;  %v2260_v29 = vld [vmem:[%s2224_s25 + $0x38] sm:$0xff]  ;;  %v2270_v31 = vld [vmem:[%s2224_s25 + $0x48] sm:$0xff]  ;;  %v906_v36 = vld [vmem:[%s2224_s25 + $0x70] sm:$0xff] }
  0xe1   : > { %v1783_v32 = vpop.f32.mrf.mxu0  ;;  %v460_v35 = vpop.f32.mrf.mxu1  ;;  %938 = vrot.lane.b32.xlu1 %v2260_v29, %s2079_s26 }
  0xe2   : > { %v440_v34 = vadd.f32 %v1783_v32, %v1711_v30  ;;  %v491_v42 = vmax.f32 %v429_v33, 0.0  ;;  %v461_v48 = vadd.f32 %v1711_v30, %v460_v35  ;;  %v501_v12 = vmax.f32 %v469_v7, 0.0  ;;  %v2277_v32 = vld [vmem:[%s2224_s25 + $0x50] sm:$0xff]  ;;  %v2280_v33 = vld [vmem:[%s2224_s25 + $0x58] sm:$0xff]  ;;  %v905_v35 = vld [vmem:[%s2224_s25 + $0x68] sm:$0xff] }
  0xe3   : > { %v431_v37 = vpop.f32.mrf.mxu0  ;;  %v1791_v39 = vpop.f32.mrf.mxu1 }
  0xe4   : > { %v432_v38 = vadd.f32 %v1711_v30, %v431_v37  ;;  %v494_v40 = vmax.f32 %v440_v34, 0.0  ;;  %v499_v58 = vmax.f32 %v461_v48, 0.0  ;;  %v472_v9 = vadd.f32 %v1791_v39, %v1711_v30  ;;  %v904_v34 = vld [vmem:[%s2224_s25 + $0x60] sm:$0xff]  ;;  %v907_v37 = vld [vmem:[%s2224_s25 + $0x78] sm:$0xff] }
  0xe5   : > { %v1786_v41 = vpop.f32.mrf.mxu0  ;;  %v463_v44 = vpop.f32.mrf.mxu1  ;;  %942 = vrot.lane.b32.xlu1 %v2270_v31, %s2079_s26 }
  0xe6   : > { %v492_v43 = vmax.f32 %v432_v38, 0.0  ;;  %v464_v49 = vadd.f32 %v1711_v30, %v463_v44  ;;  %v508_v51 = vpack.c.bf16 %v494_v40, %v493_v45  ;;  %v453_v56 = vadd.f32 %v1786_v41, %v1711_v30  ;;  %v1721_v40 = vld [vmem:[%s3011_s5] ss:$0 sm:$0xff] }
  0xe7   : > { %v444_v46 = vpop.f32.mrf.mxu0  ;;  %v1794_v50 = vpop.f32.mrf.mxu1  ;;  %v502_v13 = vmax.f32 %v472_v9, 0.0 }
  0xe8   : > { %v507_v47 = vpack.c.bf16 %v492_v43, %v491_v42  ;;  %v445_v53 = vadd.f32 %v1711_v30, %v444_v46  ;;  %v500_v60 = vmax.f32 %v464_v49, 0.0  ;;  %v497_v2 = vmax.f32 %v453_v56, 0.0 }
  0xe9   : > { %v1787_v52 = vpop.f32.mrf.mxu0  ;;  %v476_v55 = vpop.f32.mrf.mxu1  ;;  %v512_v15 = vpack.c.bf16 %v502_v13, %v501_v12  ;;  %v485_v16 = vadd.f32 %v1794_v50, %v1711_v30  ;;  %946 = vrot.lane.b32.xlu1 %v2280_v33, %s2079_s26 }
  0xea   : > { %v456_v54 = vadd.f32 %v1787_v52, %v1711_v30  ;;  %1800 = vmatprep.mubr.msk.bf16.mxu1 %vm538_vm1, %v507_v47  ;;  %v495_v63 = vmax.f32 %v445_v53, 0.0  ;;  %v511_v4 = vpack.c.bf16 %v500_v60, %v499_v58  ;;  %v477_v5 = vadd.f32 %v1711_v30, %v476_v55 }
  0xeb   : > { %v447_v57 = vpop.f32.mrf.mxu0  ;;  %1801 = vmatmul.mubr.msk.bf16.vlgmr.msra.gmra.mxu1 %vm538_vm1, %v508_v51  ;;  %v1795_v61 = vpop.f32.mrf.mxu1  ;;  %v505_v18 = vmax.f32 %v485_v16, 0.0 }
  0xec   : > { %v448_v59 = vadd.f32 %v1711_v30, %v447_v57  ;;  %v498_v62 = vmax.f32 %v456_v54, 0.0  ;;  %v503_v10 = vmax.f32 %v477_v5, 0.0  ;;  %v488_v17 = vadd.f32 %v1795_v61, %v1711_v30 }
  0xed   : > { %v479_v1 = vpop.f32.mrf.mxu1  ;;  %950 = vrot.lane.b32.xlu1 %v905_v35, %s2079_s26 }
  0xee   : > { %v496_v0 = vmax.f32 %v448_v59, 0.0  ;;  %v480_v6 = vadd.f32 %v1711_v30, %v479_v1  ;;  %v510_v8 = vpack.c.bf16 %v498_v62, %v497_v2  ;;  %v506_v19 = vmax.f32 %v488_v17, 0.0  ;;  %v2267_v30 = vld [vmem:[%s2224_s25 + $0x40] sm:$0xff] }
  0xef   : > { %940 = vrot.lane.b32.xlu0 %v2267_v30, %s2079_s26 }
  0xf0   : > { %v509_v3 = vpack.c.bf16 %v496_v0, %v495_v63  ;;  %v504_v11 = vmax.f32 %v480_v6, 0.0  ;;  %v514_v20 = vpack.c.bf16 %v506_v19, %v505_v18 }
  0xf1   : > { %954 = vrot.lane.b32.xlu1 %v907_v37, %s2079_s26 }
  0xf2   : > { %1804 = vmatprep.mubr.msk.bf16.mxu1 %vm538_vm1, %v509_v3  ;;  %v513_v14 = vpack.c.bf16 %v504_v11, %v503_v10 }
  0xf3   : > { %1805 = vmatmul.mubr.msk.bf16.gmra.mxu1 %vm538_vm1, %v510_v8  ;;  %944 = vrot.lane.b32.xlu0 %v2277_v32, %s2079_s26 }
  0xf4   : > { %1808 = vmatprep.mubr.msk.bf16.mxu1 %vm538_vm1, %v511_v4 }
  0xf7   : > { %948 = vrot.lane.b32.xlu0 %v904_v34, %s2079_s26 }
  0xfb   : > { %1809 = vmatmul.mubr.msk.bf16.gmra.mxu1 %vm538_vm1, %v512_v15  ;;  %952 = vrot.lane.b32.xlu0 %v906_v36, %s2079_s26 }
  0xfc   : > { %1812 = vmatprep.mubr.msk.bf16.mxu1 %vm538_vm1, %v513_v14 }
 0x103   : > { %1813 = vmatmul.mubr.msk.bf16.gmra.mxu1 %vm538_vm1, %v514_v20 }
 0x1ab   : > { %v1802_v38 = vpop.f32.mrf.mxu1 }
 0x1ac   : > { %v606_v44 = vadd.f32 %v1802_v38, %v1721_v40 }
 0x1ad   : > { %v597_v39 = vpop.f32.mrf.mxu1 }
 0x1ae   : > { %v598_v42 = vadd.f32 %v1721_v40, %v597_v39  ;;  %v662_v51 = vmax.f32 %v606_v44, 0.0  ;;  %v2308_v44 = vld [vmem:[%s3013_s7] ss:$0 sm:$0xff] }
 0x1af   : > { %v1803_v41 = vpop.f32.mrf.mxu1 }
 0x1b0   : > { %v609_v43 = vadd.f32 %v1803_v41, %v1721_v40  ;;  %v660_v49 = vmax.f32 %v598_v42, 0.0 }
 0x1b1   : > { %v600_v45 = vpop.f32.mrf.mxu1 }
 0x1b2   : > { %v601_v46 = vadd.f32 %v1721_v40, %v600_v45  ;;  %v663_v47 = vmax.f32 %v609_v43, 0.0 }
 0x1b3   : > { %v1806_v48 = vpop.f32.mrf.mxu1 }
 0x1b4   : > { %v661_v50 = vmax.f32 %v601_v46, 0.0  ;;  %v677_v54 = vpack.c.bf16 %v663_v47, %v662_v51  ;;  %v622_v58 = vadd.f32 %v1806_v48, %v1721_v40 }
 0x1b5   : > { %v613_v52 = vpop.f32.mrf.mxu1 }
 0x1b6   : > { %v676_v53 = vpack.c.bf16 %v661_v50, %v660_v49  ;;  %v614_v56 = vadd.f32 %v1721_v40, %v613_v52  ;;  %v666_v1 = vmax.f32 %v622_v58, 0.0 }
 0x1b7   : > { %v1807_v55 = vpop.f32.mrf.mxu1 }
 0x1b8   : > { %v625_v57 = vadd.f32 %v1807_v55, %v1721_v40  ;;  %1820 = vmatprep.mubr.msk.bf16.mxu0 %vm538_vm1, %v676_v53  ;;  %v664_v63 = vmax.f32 %v614_v56, 0.0 }
 0x1b9   : > { %v616_v59 = vpop.f32.mrf.mxu1  ;;  %1821 = vmatmul.mubr.msk.bf16.vlgmr.msra.gmra.mxu0 %vm538_vm1, %v677_v54  ;;  %v2323_v54 = vpop.permute.xlu0 %924 }
 0x1ba   : > { %v617_v60 = vadd.f32 %v1721_v40, %v616_v59  ;;  %v667_v61 = vmax.f32 %v625_v57, 0.0 }
 0x1bb   : > { %v1810_v62 = vpop.f32.mrf.mxu1 }
 0x1bc   : > { %v665_v0 = vmax.f32 %v617_v60, 0.0  ;;  %v679_v4 = vpack.c.bf16 %v667_v61, %v666_v1  ;;  %v638_v8 = vadd.f32 %v1810_v62, %v1721_v40  ;;  %v929_v1 = vpop.permute.xlu1 %928 }
 0x1bd   : > { %v629_v2 = vpop.f32.mrf.mxu1 }
 0x1be   : > { %v678_v3 = vpack.c.bf16 %v665_v0, %v664_v63  ;;  %v630_v6 = vadd.f32 %v1721_v40, %v629_v2  ;;  %v670_v15 = vmax.f32 %v638_v8, 0.0 }
 0x1bf   : > { %v1811_v5 = vpop.f32.mrf.mxu1 }
 0x1c0   : > { %v641_v7 = vadd.f32 %v1811_v5, %v1721_v40  ;;  %1824 = vmatprep.mubr.msk.bf16.mxu0 %vm538_vm1, %v678_v3  ;;  %v668_v13 = vmax.f32 %v630_v6, 0.0 }
 0x1c1   : > { %v632_v9 = vpop.f32.mrf.mxu1  ;;  %1825 = vmatmul.mubr.msk.bf16.gmra.mxu0 %vm538_vm1, %v679_v4 }
 0x1c2   : > { %v633_v10 = vadd.f32 %v1721_v40, %v632_v9  ;;  %v671_v11 = vmax.f32 %v641_v7, 0.0  ;;  %v2346_v7 = vpop.permute.xlu0 %926 }
 0x1c3   : > { %v1814_v12 = vpop.f32.mrf.mxu1 }
 0x1c4   : > { %v669_v14 = vmax.f32 %v633_v10, 0.0  ;;  %v681_v18 = vpack.c.bf16 %v671_v11, %v670_v15  ;;  %v654_v34 = vadd.f32 %v1814_v12, %v1721_v40 }
 0x1c5   : > { %v645_v16 = vpop.f32.mrf.mxu1 }
 0x1c6   : > { %v680_v17 = vpack.c.bf16 %v669_v14, %v668_v13  ;;  %v646_v20 = vadd.f32 %v1721_v40, %v645_v16  ;;  %v674_v41 = vmax.f32 %v654_v34, 0.0 }
 0x1c7   : > { %v1815_v19 = vpop.f32.mrf.mxu1 }
 0x1c8   : > { %v657_v21 = vadd.f32 %v1815_v19, %v1721_v40  ;;  %1828 = vmatprep.mubr.msk.bf16.mxu0 %vm538_vm1, %v680_v17  ;;  %v672_v38 = vmax.f32 %v646_v20, 0.0 }
 0x1c9   : > { %v648_v35 = vpop.f32.mrf.mxu1  ;;  %1829 = vmatmul.mubr.msk.bf16.gmra.mxu0 %vm538_vm1, %v681_v18  ;;  %v931_v18 = vpop.permute.xlu1 %930 }
 0x1ca   : > { %v649_v36 = vadd.f32 %v1721_v40, %v648_v35  ;;  %v675_v37 = vmax.f32 %v657_v21, 0.0 }
 0x1cc   : > { %v673_v39 = vmax.f32 %v649_v36, 0.0  ;;  %v683_v43 = vpack.c.bf16 %v675_v37, %v674_v41  ;;  %v2369_v36 = vpop.permute.xlu0 %932 }
 0x1ce   : > { %v682_v42 = vpack.c.bf16 %v673_v39, %v672_v38 }
 0x1d0   : > { %1832 = vmatprep.mubr.msk.bf16.mxu0 %vm538_vm1, %v682_v42 }
 0x1d1   : > { %1833 = vmatmul.mubr.msk.bf16.gmra.mxu0 %vm538_vm1, %v683_v43 }
 0x279   : > { %v1822_v45 = vpop.f32.mrf.mxu0 }
 0x27a   : > { %v2311_v46 = vadd.f32 %v1822_v45, %v2308_v44 }
 0x27b   : > { %v765_v40 = vpop.f32.mrf.mxu0 }
 0x27c   : > { %v830_v47 = vmax.f32 %v2311_v46, -20.0  ;;  %v2315_v48 = vadd.f32 %v2308_v44, %v765_v40 }
 0x27d   : > { %v1823_v49 = vpop.f32.mrf.mxu0 }
 0x27e   : > { %v2317_v50 = vmin.f32 %v830_v47, 2.0  ;;  %v828_v51 = vmax.f32 %v2315_v48, -20.0  ;;  %v2321_v52 = vadd.f32 %v1823_v49, %v2308_v44 }
 0x27f   : > { %v768_v53 = vpop.f32.mrf.mxu0 }
 0x280   : > { %v864_v55 = vmul.f32 1.442695, %v2317_v50  ;;  %v2326_v56 = vmin.f32 %v828_v51, 2.0  ;;  %v831_v57 = vmax.f32 %v2321_v52, -20.0  ;;  %v2330_v58 = vadd.f32 %v2308_v44, %v768_v53  ;;  %v2385_v53 = vpop.permute.xlu1 %934 }
 0x281   : > { %v1826_v59 = vpop.f32.mrf.mxu0 }
 0x282   : > { %1885 = vpow2.f32 %v864_v55  ;;  %v860_v60 = vmul.f32 1.442695, %v2326_v56  ;;  %v2333_v61 = vmin.f32 %v831_v57, 2.0  ;;  %v829_v62 = vmax.f32 %v2330_v58, -20.0 }
 0x283   : > { %v2337_v63 = vadd.f32 %v1826_v59, %v2308_v44  ;;  %v781_v0 = vpop.f32.mrf.mxu0 }
 0x284   : > { %1887 = vpow2.f32 %v860_v60  ;;  %v866_v2 = vmul.f32 1.442695, %v2333_v61  ;;  %v2340_v3 = vmin.f32 %v829_v62, 2.0  ;;  %v2343_v4 = vadd.f32 %v2308_v44, %v781_v0 }
 0x285   : > { %v834_v5 = vmax.f32 %v2337_v63, -20.0  ;;  %v1827_v6 = vpop.f32.mrf.mxu0 }
 0x286   : > { %1889 = vpow2.f32 %v866_v2  ;;  %v862_v8 = vmul.f32 1.442695, %v2340_v3  ;;  %v832_v9 = vmax.f32 %v2343_v4, -20.0  ;;  %v2351_v10 = vadd.f32 %v1827_v6, %v2308_v44 }
 0x287   : > { %v2353_v11 = vmin.f32 %v834_v5, 2.0  ;;  %v784_v12 = vpop.f32.mrf.mxu0  ;;  %v937_v5 = vpop.permute.xlu0 %936 }
 0x288   : > { %1891 = vpow2.f32 %v862_v8  ;;  %v2355_v13 = vmin.f32 %v832_v9, 2.0  ;;  %v835_v14 = vmax.f32 %v2351_v10, -20.0  ;;  %v2359_v15 = vadd.f32 %v2308_v44, %v784_v12 }
 0x289   : > { %v872_v16 = vmul.f32 1.442695, %v2353_v11  ;;  %v1830_v17 = vpop.f32.mrf.mxu0 }
 0x28a   : > { %v868_v19 = vmul.f32 1.442695, %v2355_v13  ;;  %v2363_v20 = vmin.f32 %v835_v14, 2.0  ;;  %v833_v21 = vmax.f32 %v2359_v15, -20.0  ;;  %v2367_v34 = vadd.f32 %v1830_v17, %v2308_v44 }
 0x28b   : > { %1893 = vpow2.f32 %v872_v16  ;;  %v797_v35 = vpop.f32.mrf.mxu0 }
 0x28c   : > { %v874_v37 = vmul.f32 1.442695, %v2363_v20  ;;  %v2372_v38 = vmin.f32 %v833_v21, 2.0  ;;  %v838_v39 = vmax.f32 %v2367_v34, -20.0  ;;  %1895 = vpow2.f32 %v868_v19 }
 0x28d   : > { %v2376_v41 = vadd.f32 %v2308_v44, %v797_v35  ;;  %v1831_v42 = vpop.f32.mrf.mxu0 }
 0x28e   : > { %1897 = vpow2.f32 %v874_v37  ;;  %v870_v43 = vmul.f32 1.442695, %v2372_v38  ;;  %v2379_v45 = vmin.f32 %v838_v39, 2.0  ;;  %v2382_v40 = vadd.f32 %v1831_v42, %v2308_v44 }
 0x28f   : > { %v1886_v47 = vpop.eup %1885  ;;  %v836_v49 = vmax.f32 %v2376_v41, -20.0  ;;  %v800_v51 = vpop.f32.mrf.mxu0 }
 0x290   : > { %1899 = vpow2.f32 %v870_v43  ;;  %v880_v55 = vmul.f32 1.442695, %v2379_v45  ;;  %v839_v57 = vmax.f32 %v2382_v40, -20.0  ;;  %v974_v59 = vmul.f32 %v1886_v47, %v929_v1  ;;  %v939_v43 = vpop.permute.xlu1 %938 }
 0x291   : > { %v1888_v60 = vpop.eup %1887  ;;  %v2389_v62 = vmin.f32 %v836_v49, 2.0  ;;  %v2392_v0 = vadd.f32 %v2308_v44, %v800_v51  ;;  %v1834_v2 = vpop.f32.mrf.mxu0 }
 0x292   : > { %1901 = vpow2.f32 %v880_v55  ;;  %v2394_v6 = vmin.f32 %v839_v57, 2.0  ;;  %v2397_v8 = vadd.f32 %v1834_v2, %v2308_v44  ;;  %1008 = vrot.lane.b32.xlu0 %v974_v59, %s2080_s13  ;;  %v972_v1 = vmul.f32 %v1888_v60, %v2323_v54  ;;  %v941_v55 = vpop.permute.xlu0 %940 }
 0x293   : > { %v1890_v9 = vpop.eup %1889  ;;  %v876_v12 = vmul.f32 1.442695, %v2389_v62  ;;  %v837_v14 = vmax.f32 %v2392_v0, -20.0  ;;  %v813_v16 = vpop.f32.mrf.mxu0 }
 0x294   : > { %v882_v17 = vmul.f32 1.442695, %v2394_v6  ;;  %v842_v19 = vmax.f32 %v2397_v8, -20.0  ;;  %v975_v21 = vmul.f32 %v1890_v9, %v931_v18  ;;  %v2406_v35 = vadd.f32 %v2308_v44, %v813_v16 }
 0x295   : > { %v1892_v37 = vpop.eup %1891  ;;  %1903 = vpow2.f32 %v876_v12  ;;  %v2408_v39 = vmin.f32 %v837_v14, 2.0  ;;  %v1835_v42 = vpop.f32.mrf.mxu0 }
 0x296   : > { %1905 = vpow2.f32 %v882_v17  ;;  %v2410_v54 = vmin.f32 %v842_v19, 2.0  ;;  %v840_v47 = vmax.f32 %v2406_v35, -20.0  ;;  %1010 = vrot.lane.b32.xlu1 %v975_v21, %s2080_s13  ;;  %1004 = vrot.lane.b32.xlu0 %v972_v1, %s2080_s13  ;;  %v2417_v49 = vadd.f32 %v1835_v42, %v2308_v44  ;;  %v943_v21 = vpop.permute.xlu1 %942 }
 0x297   : > { %v878_v18 = vmul.f32 1.442695, %v2408_v39  ;;  %v816_v51 = vpop.f32.mrf.mxu0  ;;  %v973_v59 = vmul.f32 %v1892_v37, %v2346_v7 }
 0x298   : > { %v1894_v57 = vpop.eup %1893  ;;  %v2420_v60 = vmin.f32 %v840_v47, 2.0  ;;  %v2423_v2 = vadd.f32 %v2308_v44, %v816_v51  ;;  %v843_v9 = vmax.f32 %v2417_v49, -20.0  ;;  %v888_v14 = vmul.f32 1.442695, %v2410_v54  ;;  %v945_v47 = vpop.permute.xlu0 %944 }
 0x299   : > { %1907 = vpow2.f32 %v878_v18  ;;  %v978_v12 = vmul.f32 %v1894_v57, %v937_v5  ;;  %v1896_v1 = vpop.eup %1895 }
 0x29a   : > { %v884_v16 = vmul.f32 1.442695, %v2420_v60  ;;  %v841_v17 = vmax.f32 %v2423_v2, -20.0  ;;  %1006 = vrot.lane.b32.xlu1 %v973_v59, %s2080_s13  ;;  %v859_v7 = vmin.f32 %v843_v9, 2.0  ;;  %v976_v5 = vmul.f32 %v1896_v1, %v2369_v36 }
 0x29b   : > { %v1898_v19 = vpop.eup %1897  ;;  %1016 = vrot.lane.b32.xlu0 %v978_v12, %s2080_s13  ;;  %v947_v12 = vpop.permute.xlu1 %946 }
 0x29c   : > { %1909 = vpow2.f32 %v884_v16  ;;  %v857_v44 = vmin.f32 %v841_v17, 2.0  ;;  %v979_v37 = vmul.f32 %v1898_v19, %v939_v43  ;;  %v890_v18 = vmul.f32 1.442695, %v859_v7 }
 0x29d   : > { %v1900_v42 = vpop.eup %1899  ;;  %1911 = vpow2.f32 %v888_v14  ;;  %v949_v14 = vpop.permute.xlu0 %948 }
 0x29e   : > { %v886_v51 = vmul.f32 1.442695, %v857_v44  ;;  %1018 = vrot.lane.b32.xlu1 %v979_v37, %s2080_s13  ;;  %v977_v59 = vmul.f32 %v1900_v42, %v2385_v53 }
 0x29f   : > { %v1902_v57 = vpop.eup %1901  ;;  %1012 = vrot.lane.b32.xlu0 %v976_v5, %s2080_s13  ;;  %v951_v37 = vpop.permute.xlu1 %950 }
 0x2a0   : > { %1913 = vpow2.f32 %v886_v51  ;;  %v982_v9 = vmul.f32 %v1902_v57, %v945_v47 }
 0x2a1   : > { %1915 = vpow2.f32 %v890_v18  ;;  %v953_v47 = vpop.permute.xlu0 %952 }
 0x2a2   : > { %v1904_v16 = vpop.eup %1903  ;;  %1014 = vrot.lane.b32.xlu1 %v977_v59, %s2080_s13 }
 0x2a3   : > { %v1906_v43 = vpop.eup %1905  ;;  %1024 = vrot.lane.b32.xlu0 %v982_v9, %s2080_s13  ;;  %v980_v1 = vmul.f32 %v1904_v16, %v941_v55  ;;  %v955_v59 = vpop.permute.xlu1 %954 }
 0x2a4   : > { %v983_v36 = vmul.f32 %v1906_v43, %v947_v12 }
 0x2a6   : > { %v1908_v17 = vpop.eup %1907  ;;  %1026 = vrot.lane.b32.xlu1 %v983_v36, %s2080_s13 }
 0x2a7   : > { %1020 = vrot.lane.b32.xlu0 %v980_v1, %s2080_s13  ;;  %v981_v19 = vmul.f32 %v1908_v17, %v943_v21  ;;  %v1372_v1 = vmul.f32 %v2227_v22, %v2227_v22 }
 0x2a9   : > { %v1910_v53 = vpop.eup %1909 }
 0x2aa   : > { %v984_v42 = vmul.f32 %v1910_v53, %v949_v14  ;;  %1022 = vrot.lane.b32.xlu1 %v981_v19, %s2080_s13  ;;  %v1912_v5 = vpop.eup %1911  ;;  %v1374_v19 = vmul.f32 %v2230_v23, %v2230_v23  ;;  %v1376_v23 = vmul.f32 %v2247_v26, %v2247_v26 }
 0x2ab   : > { %v986_v57 = vmul.f32 %v1912_v5, %v953_v47  ;;  %v1375_v47 = vmul.f32 %v2240_v25, %v2240_v25 }
 0x2ac   : > { %1028 = vrot.lane.b32.xlu0 %v984_v42, %s2080_s13 }
 0x2ad   : > { %v1914_v18 = vpop.eup %1913 }
 0x2ae   : > { %v985_v51 = vmul.f32 %v1914_v18, %v951_v37  ;;  %v1916_v55 = vpop.eup %1915 }
 0x2af   : > { %v987_v9 = vmul.f32 %v1916_v55, %v955_v59 }
 0x2b0   : > { %1030 = vrot.lane.b32.xlu1 %v985_v51, %s2080_s13  ;;  %1032 = vrot.lane.b32.xlu0 %v986_v57, %s2080_s13 }
 0x2b4   : > { %1034 = vrot.lane.b32.xlu1 %v987_v9, %s2080_s13  ;;  %1436 = vrot.lane.b32.xlu0 %v2326_v56, %s2080_s13 }
 0x2b8   : > { %1438 = vrot.lane.b32.xlu1 %v2340_v3, %s2080_s13  ;;  %1440 = vrot.lane.b32.xlu0 %v2317_v50, %s2080_s13 }
 0x2bc   : > { %1442 = vrot.lane.b32.xlu1 %v2333_v61, %s2080_s13  ;;  %1444 = vrot.lane.b32.xlu0 %v2355_v13, %s2080_s13 }
 0x2c0   : > { %1446 = vrot.lane.b32.xlu1 %v2372_v38, %s2080_s13  ;;  %1448 = vrot.lane.b32.xlu0 %v2353_v11, %s2080_s13 }
 0x2c4   : > { %1450 = vrot.lane.b32.xlu1 %v2363_v20, %s2080_s13  ;;  %1452 = vrot.lane.b32.xlu0 %v2389_v62, %s2080_s13 }
 0x2c8   : > { %1454 = vrot.lane.b32.xlu1 %v2408_v39, %s2080_s13  ;;  %1456 = vrot.lane.b32.xlu0 %v2379_v45, %s2080_s13 }
 0x2cc   : > { %1458 = vrot.lane.b32.xlu1 %v2394_v6, %s2080_s13  ;;  %1460 = vrot.lane.b32.xlu0 %v2420_v60, %s2080_s13 }
 0x2d0   : > { %1462 = vrot.lane.b32.xlu1 %v857_v44, %s2080_s13  ;;  %1464 = vrot.lane.b32.xlu0 %v2410_v54, %s2080_s13 }
 0x2d4   : > { %1466 = vrot.lane.b32.xlu1 %v859_v7, %s2080_s13  ;;  %s2023_s13 = scalar_lea.vmem %s2022_s12, 4096 }
 0x2d5   : > { %p2025_p1 = scmp.lt.s32.totalorder %s2023_s13, %s2017_s22 }
 0x2d7   : > { %p2026_p2 = por %p2025_p1, %p2024_p0 }
 0x2d9   : > { %p2027_p3 = pnand %p2026_p2, %p2020_p13 }
 0x304   : > { %v1009_v50 = vpop.permute.xlu0 %1008 }
 0x305   : > { %v2475_v56 = vadd.f32 %v1009_v50, %v2311_v46 }
 0x307   : > { %v2484_v20 = vmul.f32 -2.0, %v2475_v56 }
 0x308   : > { %v1011_v61 = vpop.permute.xlu1 %1010  ;;  %v1005_v3 = vpop.permute.xlu0 %1004 }
 0x309   : > { %v2478_v11 = vadd.f32 %v1011_v61, %v2321_v52  ;;  %v2481_v13 = vadd.f32 %v1005_v3, %v2315_v48  ;;  %v1118_v52 = vand.u32 2147483647, %v2484_v20 }
 0x30b   : > { %v2487_v38 = vmul.f32 -2.0, %v2481_v13  ;;  %v2490_v62 = vmul.f32 -2.0, %v2478_v11 }
 0x30c   : > { %v1007_v45 = vpop.permute.xlu1 %1006 }
 0x30d   : > { %v1017_v46 = vpop.permute.xlu0 %1016  ;;  %v1116_v6 = vand.u32 2147483647, %v2487_v38  ;;  %v2494_v39 = vadd.f32 %v1007_v45, %v2330_v58  ;;  %v1119_v21 = vand.u32 2147483647, %v2490_v62  ;;  %v1134_v58 = vsub.f32 0.0, %v1118_v52 }
 0x30e   : > { %v2501_v60 = vadd.f32 %v1017_v46, %v2337_v63  ;;  %v2549_v46 = vmul.f32 0.5, %v1375_v47  ;;  %v1377_v52 = vmul.f32 %v2250_v27, %v2250_v27 }
 0x30f   : > { %v1132_v48 = vsub.f32 0.0, %v1116_v6  ;;  %v2498_v54 = vmul.f32 -2.0, %v2494_v39  ;;  %v1135_v53 = vsub.f32 0.0, %v1119_v21  ;;  %v1152_v18 = vmul.f32 1.442695, %v1134_v58 }
 0x310   : > { %v1019_v7 = vpop.permute.xlu1 %1018  ;;  %v2514_v63 = vmul.f32 -2.0, %v2501_v60  ;;  %v2551_v6 = vmul.f32 0.5, %v1376_v23 }
 0x311   : > { %v1013_v44 = vpop.permute.xlu0 %1012  ;;  %v1117_v12 = vand.u32 2147483647, %v2498_v54  ;;  %v2506_v16 = vadd.f32 %v1019_v7, %v2351_v10  ;;  %v1148_v43 = vmul.f32 1.442695, %v1132_v48  ;;  %v1373_v10 = vmul.f32 %v2237_v24, %v2237_v24 }
 0x312   : > { %v2509_v36 = vadd.f32 %v1013_v44, %v2343_v4  ;;  %v2533_v24 = vmul.f32 0.5, %v1372_v1  ;;  %v1122_v51 = vand.u32 2147483647, %v2514_v63  ;;  %v1154_v25 = vmul.f32 1.442695, %v1135_v53 }
 0x313   : > { %v1133_v14 = vsub.f32 0.0, %v1117_v12  ;;  %v2521_v4 = vmul.f32 -2.0, %v2506_v16  ;;  %1917 = vpow2.f32 %v1148_v43  ;;  %v2542_v9 = vmul.f32 0.5, %v1373_v10 }
 0x314   : > { %v1015_v17 = vpop.permute.xlu1 %1014  ;;  %v2524_v5 = vmul.f32 -2.0, %v2509_v36  ;;  %v1378_v48 = vmul.f32 %v2257_v28, %v2257_v28  ;;  %v1379_v12 = vmul.f32 %v2260_v29, %v2260_v29  ;;  %v1380_v29 = vmul.f32 %v2267_v30, %v2267_v30 }
 0x315   : > { %v1025_v37 = vpop.permute.xlu0 %1024  ;;  %v1150_v42 = vmul.f32 1.442695, %v1133_v14  ;;  %v2527_v22 = vadd.f32 %v1015_v17, %v2359_v15  ;;  %v2540_v15 = vmul.f32 0.5, %v1374_v19  ;;  %v1123_v61 = vand.u32 2147483647, %v2521_v4 }
 0x316   : > { %v1120_v57 = vand.u32 2147483647, %v2524_v5  ;;  %v2545_v50 = vadd.f32 %v1025_v37, %v2367_v34  ;;  %v1138_v34 = vsub.f32 0.0, %v1122_v51  ;;  %v2574_v17 = vmul.f32 0.5, %v1377_v52 }
 0x317   : > { %v2538_v55 = vmul.f32 -2.0, %v2527_v22  ;;  %1919 = vpow2.f32 %v1150_v42  ;;  %v1139_v27 = vsub.f32 0.0, %v1123_v61 }
 0x318   : > { %v1027_v59 = vpop.permute.xlu1 %1026  ;;  %3036 = vst [vmem:[#allocation5_spill] sm:$0xff] %v2545_v50  ;;  %v1136_v3 = vsub.f32 0.0, %v1120_v57  ;;  %1921 = vpow2.f32 %v1152_v18  ;;  %v2563_v43 = vmul.f32 -2.0, %v2545_v50  ;;  %v1160_v53 = vmul.f32 1.442695, %v1138_v34 }
 0x319   : > { %v1021_v26 = vpop.permute.xlu0 %1020  ;;  %v1121_v45 = vand.u32 2147483647, %v2538_v55  ;;  %v2566_v1 = vadd.f32 %v1027_v59, %v2382_v40  ;;  %1923 = vpow2.f32 %v1154_v25  ;;  %v1381_v40 = vmul.f32 %v2270_v31, %v2270_v31 }
 0x31a   : > { %v2558_v21 = vadd.f32 %v1021_v26, %v2376_v41  ;;  %v1156_v58 = vmul.f32 1.442695, %v1136_v3  ;;  %v1162_v31 = vmul.f32 1.442695, %v1139_v27  ;;  %v2599_v59 = vmul.f32 0.5, %v1378_v48 }
 0x31b   : > { %v1137_v7 = vsub.f32 0.0, %v1121_v45  ;;  %3037 = vst [vmem:[#allocation6_spill] sm:$0xff] %v2566_v1  ;;  %v2589_v47 = vmul.f32 -2.0, %v2566_v1  ;;  %v2601_v25 = vmul.f32 0.5, %v1379_v12  ;;  %v2625_v27 = vmul.f32 0.5, %v1380_v29 }
 0x31c   : > { %v1023_v44 = vpop.permute.xlu1 %1022  ;;  %v2569_v28 = vmul.f32 -2.0, %v2558_v21  ;;  %1925 = vpow2.f32 %v1156_v58 }
 0x31d   : > { %v2572_v14 = vadd.f32 %v1023_v44, %v2392_v0  ;;  %v1158_v19 = vmul.f32 1.442695, %v1137_v7  ;;  %v1126_v0 = vand.u32 2147483647, %v2563_v43  ;;  %3040 = vst [vmem:[#allocation9_spill] sm:$0xff] %v2589_v47  ;;  %3047 = vst [vmem:[#allocation16_spill] sm:$0xff] %v2625_v27 }
 0x31e   : > { %v1029_v41 = vpop.permute.xlu0 %1028  ;;  %v1124_v37 = vand.u32 2147483647, %v2569_v28  ;;  %v1127_v34 = vand.u32 2147483647, %v2589_v47 }
 0x31f   : > { %3038 = vst [vmem:[#allocation7_spill] sm:$0xff] %v2572_v14  ;;  %v2579_v10 = vadd.f32 %v1029_v41, %v2406_v35  ;;  %v2585_v42 = vmul.f32 -2.0, %v2572_v14  ;;  %v2596_v35 = vmul.f32 %v2277_v32, %v2277_v32  ;;  %1927 = vpow2.f32 %v1158_v19 }
 0x320   : > { %v1140_v23 = vsub.f32 0.0, %v1124_v37  ;;  %v2606_v61 = vpop.eup %1917  ;;  %1929 = vpow2.f32 %v1160_v53  ;;  %v1142_v52 = vsub.f32 0.0, %v1126_v0  ;;  %v2627_v41 = vmul.f32 0.5, %v1381_v40 }
 0x321   : > { %3039 = vst [vmem:[#allocation8_spill] sm:$0xff] %v2579_v10  ;;  %v2592_v30 = vmul.f32 -2.0, %v2579_v10  ;;  %v1125_v18 = vand.u32 2147483647, %v2585_v42  ;;  %1931 = vpow2.f32 %v1162_v31  ;;  %v1180_v53 = vadd.f32 1.0, %v2606_v61 }
 0x322   : > { %v1031_v51 = vpop.permute.xlu1 %1030  ;;  %v1033_v57 = vpop.permute.xlu0 %1032  ;;  %v1164_v3 = vmul.f32 1.442695, %v1140_v23  ;;  %3048 = vst [vmem:[#allocation17_spill] sm:$0xff] %v2627_v41  ;;  %v1168_v29 = vmul.f32 1.442695, %v1142_v52 }
 0x323   : > { %3041 = vst [vmem:[#allocation10_spill] sm:$0xff] %v2592_v30  ;;  %v2604_v26 = vadd.f32 %v1031_v51, %v2423_v2  ;;  %v1141_v32 = vsub.f32 0.0, %v1125_v18  ;;  %v2609_v45 = vadd.f32 %v1033_v57, %v2397_v8  ;;  %v1128_v48 = vand.u32 2147483647, %v2592_v30 }
 0x324   : > { %v2618_v2 = vmul.f32 %v2280_v33, %v2280_v33  ;;  %v2623_v8 = vpop.eup %1919  ;;  %1933 = vpow2.f32 %v1164_v3  ;;  %v1143_v18 = vsub.f32 0.0, %v1127_v34 }
 0x325   : > { %3042 = vst [vmem:[#allocation11_spill] sm:$0xff] %v2604_v26  ;;  %3043 = vst [vmem:[#allocation12_spill] sm:$0xff] %v2609_v45  ;;  %v2614_v7 = vmul.f32 -2.0, %v2604_v26  ;;  %v1166_v44 = vmul.f32 1.442695, %v1141_v32  ;;  %v2621_v12 = vmul.f32 -2.0, %v2609_v45  ;;  %v2631_v37 = vpop.eup %1921 }
 0x326   : > { %3045 = vst [vmem:[#allocation14_spill] sm:$0xff] %v2618_v2  ;;  %v1035_v58 = vpop.permute.xlu1 %1034  ;;  %v1144_v40 = vsub.f32 0.0, %v1128_v48  ;;  %v1189_v32 = vadd.f32 1.0, %v2623_v8  ;;  %v2644_v33 = vpop.eup %1923  ;;  %v1170_v23 = vmul.f32 1.442695, %v1143_v18  ;;  %v1192_v19 = vmul.f32 -0.5, %v2623_v8 }
 0x327   : > { %3044 = vst [vmem:[#allocation13_spill] sm:$0xff] %v2614_v7  ;;  %3046 = vst [vmem:[#allocation15_spill] sm:$0xff] %v2621_v12  ;;  %v1129_v0 = vand.u32 2147483647, %v2614_v7  ;;  %v2636_v31 = vadd.f32 %v1035_v58, %v2417_v49  ;;  %1935 = vpow2.f32 %v1166_v44  ;;  %v1130_v51 = vand.u32 2147483647, %v2621_v12 }
 0x328   : > { %1937 = vlog2.f32 %v1180_v53  ;;  %v1183_v49 = vmul.f32 -0.5, %v2606_v61  ;;  %v1198_v58 = vadd.f32 1.0, %v2631_v37  ;;  %v1172_v53 = vmul.f32 1.442695, %v1144_v40 }
 0x329   : > { %3049 = vst [vmem:[#allocation18_spill] sm:$0xff] %v2636_v31  ;;  %v2641_v57 = vmul.f32 -2.0, %v2636_v31  ;;  %v1145_v48 = vsub.f32 0.0, %v1129_v0  ;;  %1939 = vlog2.f32 %v1189_v32  ;;  %v2654_v45 = vpop.eup %1925  ;;  %v1146_v3 = vsub.f32 0.0, %v1130_v51 }
 0x32a   : > { %1941 = vpow2.f32 %v1168_v29  ;;  %v1207_v26 = vadd.f32 1.0, %v2644_v33  ;;  %v1184_v0 = vadd.f32 1.0, %v1183_v49  ;;  %v1186_v18 = vand.u32 2147483647, %v2606_v61 }
 0x32b   : > { %3050 = vst [vmem:[#allocation19_spill] sm:$0xff] %v2641_v57  ;;  %v1131_v31 = vand.u32 2147483647, %v2641_v57  ;;  %1943 = vlog2.f32 %v1198_v58  ;;  %v1174_v44 = vmul.f32 1.442695, %v1145_v48  ;;  %v1216_v51 = vadd.f32 1.0, %v2654_v45 }
 0x32c   : > { %v2659_v32 = vpop.eup %1927  ;;  %1945 = vlog2.f32 %v1207_v26  ;;  %v1176_v52 = vmul.f32 1.442695, %v1146_v3  ;;  %v1195_v49 = vand.u32 2147483647, %v2623_v8  ;;  %v1201_v58 = vmul.f32 -0.5, %v2631_v37 }
 0x32d   : > { %v2663_v57 = vpop.eup %1929  ;;  %1947 = vpow2.f32 %v1170_v23  ;;  %v1147_v40 = vsub.f32 0.0, %v1131_v31  ;;  %v1204_v34 = vand.u32 2147483647, %v2631_v37  ;;  %v1210_v26 = vmul.f32 -0.5, %v2644_v33 }
 0x32e   : > { %1949 = vpow2.f32 %v1172_v53  ;;  %v2669_v48 = vpop.eup %1931  ;;  %v1225_v23 = vadd.f32 1.0, %v2659_v32  ;;  %v1185_v31 = vmul.f32 %v2606_v61, %v1184_v0  ;;  %vm2675_vm2 = vcmp.lt.f32.partialorder %v1186_v18, 0.0004427343 }
 0x32f   : > { %1951 = vlog2.f32 %v1216_v51  ;;  %v1193_v3 = vadd.f32 1.0, %v1192_v19  ;;  %v1178_v12 = vmul.f32 1.442695, %v1147_v40  ;;  %v1219_v7 = vmul.f32 -0.5, %v2654_v45 }
 0x330   : > { %1953 = vpow2.f32 %v1174_v44  ;;  %v1234_v10 = vadd.f32 1.0, %v2663_v57  ;;  %vm2683_vm3 = vcmp.lt.f32.partialorder %v1195_v49, 0.0004427343  ;;  %v1202_v44 = vadd.f32 1.0, %v1201_v58 }
 0x331   : > { %v2679_v53 = vpop.eup %1933  ;;  %1955 = vlog2.f32 %v1225_v23  ;;  %v1243_v61 = vadd.f32 1.0, %v2669_v48  ;;  %vm2690_vm4 = vcmp.lt.f32.partialorder %v1204_v34, 0.0004427343  ;;  %v1211_v18 = vadd.f32 1.0, %v1210_v26 }
 0x332   : > { %1957 = vpow2.f32 %v1176_v52  ;;  %v1213_v40 = vand.u32 2147483647, %v2644_v33  ;;  %v1222_v52 = vand.u32 2147483647, %v2654_v45  ;;  %v1228_v49 = vmul.f32 -0.5, %v2659_v32 }
 0x333   : > { %1959 = vlog2.f32 %v1234_v10  ;;  %v1252_v58 = vadd.f32 1.0, %v2679_v53  ;;  %v1194_v34 = vmul.f32 %v2623_v8, %v1193_v3  ;;  %v1220_v27 = vadd.f32 1.0, %v1219_v7 }
 0x334   : > { %v2688_v0 = vpop.eup %1935  ;;  %1961 = vlog2.f32 %v1243_v61  ;;  %v1203_v26 = vmul.f32 %v2631_v37, %v1202_v44  ;;  %v1237_v2 = vmul.f32 -0.5, %v2663_v57  ;;  %v1212_v61 = vmul.f32 %v2644_v33, %v1211_v18 }
 0x335   : > { %v1938_v23 = vpop.eup %1937  ;;  %1963 = vpow2.f32 %v1178_v12  ;;  %vm2706_vm5 = vcmp.lt.f32.partialorder %v1213_v40, 0.0004427343  ;;  %v1261_v12 = vadd.f32 1.0, %v2688_v0  ;;  %vm2711_vm6 = vcmp.lt.f32.partialorder %v1222_v52, 0.0004427343 }
 0x336   : > { %v1940_v41 = vpop.eup %1939  ;;  %v1182_v1 = vmul.f32 0.6931472, %v1938_v23  ;;  %1965 = vlog2.f32 %v1252_v58  ;;  %v1231_v37 = vand.u32 2147483647, %v2659_v32  ;;  %v1246_v3 = vmul.f32 -0.5, %v2669_v48 }
 0x337   : > { %v1191_v30 = vmul.f32 0.6931472, %v1940_v41  ;;  %v2701_v10 = vpop.eup %1941  ;;  %v1229_v41 = vadd.f32 1.0, %v1228_v49  ;;  %v1221_v33 = vmul.f32 %v2654_v45, %v1220_v27  ;;  %1967 = vlog2.f32 %v1261_v12 }
 0x338   : > { %v1188_v47 = vsel %vm2675_vm2, %v1185_v31, %v1182_v1  ;;  %v1944_v7 = vpop.eup %1943  ;;  %v1240_v31 = vand.u32 2147483647, %v2663_v57  ;;  %v3061_v18 = vmax.f32 %v2487_v38, 0.0  ;;  %v1238_v49 = vadd.f32 1.0, %v1237_v2 }
 0x339   : > { %v1946_v29 = vpop.eup %1945  ;;  %v1200_v1 = vmul.f32 0.6931472, %v1944_v7  ;;  %v1197_v23 = vsel %vm2683_vm3, %v1194_v34, %v1191_v30  ;;  %v1249_v45 = vand.u32 2147483647, %v2669_v48  ;;  %v1255_v27 = vmul.f32 -0.5, %v2679_v53  ;;  %v2741_v34 = vpop.permute.xlu0 %1436 }
 0x33a   : > { %v2719_v44 = vpop.eup %1947  ;;  %v1324_v40 = vadd.f32 %v1188_v47, %v3061_v18  ;;  %v1209_v52 = vmul.f32 0.6931472, %v1946_v29  ;;  %v1270_v12 = vadd.f32 1.0, %v2701_v10  ;;  %v3062_v38 = vmax.f32 %v2484_v20, 0.0 }
 0x33b   : > { %v2725_v58 = vpop.eup %1949  ;;  %v1206_v7 = vsel %vm2690_vm4, %v1203_v26, %v1200_v1  ;;  %v1230_v51 = vmul.f32 %v2659_v32, %v1229_v41  ;;  %vm2735_vm7 = vcmp.lt.f32.partialorder %v1231_v37, 0.0004427343  ;;  %v1247_v2 = vadd.f32 1.0, %v1246_v3 }
 0x33c   : > { %v1952_v50 = vpop.eup %1951  ;;  %v1326_v47 = vadd.f32 %v1206_v7, %v3062_v38  ;;  %v3065_v26 = vmax.f32 %v2498_v54, 0.0  ;;  %v1215_v1 = vsel %vm2706_vm5, %v1212_v61, %v1209_v52  ;;  %vm2747_vm9 = vcmp.lt.f32.partialorder %v1240_v31, 0.0004427343  ;;  %v2756_v54 = vpop.permute.xlu1 %1438 }
 0x33d   : > { %v2739_v19 = vpop.eup %1953  ;;  %v1218_v20 = vmul.f32 0.6931472, %v1952_v50  ;;  %v1340_v41 = vadd.f32 %v1324_v40, %v2481_v13  ;;  %v1239_v3 = vmul.f32 %v2663_v57, %v1238_v49  ;;  %1969 = vlog2.f32 %v1270_v12 }
 0x33e   : > { %v1325_v29 = vadd.f32 %v1197_v23, %v3065_v26  ;;  %v1956_v32 = vpop.eup %1955  ;;  %v1342_v37 = vadd.f32 %v1326_v47, %v2475_v56  ;;  %vm2760_vm10 = vcmp.lt.f32.partialorder %v1249_v45, 0.0004427343  ;;  %v1256_v31 = vadd.f32 1.0, %v1255_v27 }
 0x33f   : > { %v2754_v7 = vpop.eup %1957  ;;  %v1224_v14 = vsel %vm2711_vm6, %v1221_v33, %v1218_v20  ;;  %v1227_v50 = vmul.f32 0.6931472, %v1956_v32  ;;  %v3070_v52 = vmax.f32 %v2490_v62, 0.0  ;;  %v1248_v57 = vmul.f32 %v2669_v48, %v1247_v2  ;;  %v1441_v32 = vpop.permute.xlu0 %1440 }
 0x340   : > { %v1960_v23 = vpop.eup %1959  ;;  %v1358_v40 = vmul.f32 2.0, %v1342_v37  ;;  %v1258_v49 = vand.u32 2147483647, %v2679_v53  ;;  %v1341_v47 = vadd.f32 %v1325_v29, %v2494_v39  ;;  %v1264_v45 = vmul.f32 -0.5, %v2688_v0 }
 0x341   : > { %v1327_v38 = vadd.f32 %v1215_v1, %v3070_v52  ;;  %v1962_v12 = vpop.eup %1961  ;;  %v1233_v8 = vsel %vm2735_vm7, %v1230_v51, %v1227_v50  ;;  %v1236_v33 = vmul.f32 0.6931472, %v1960_v23  ;;  %v1356_v27 = vmul.f32 2.0, %v1340_v41  ;;  %v1443_v52 = vpop.permute.xlu1 %1442 }
 0x342   : > { %v2772_v26 = vpop.eup %1963  ;;  %v1406_v20 = vsub.f32 %v1358_v40, %v2540_v15  ;;  %v3071_v62 = vmax.f32 %v2524_v5, 0.0  ;;  %v1245_v48 = vmul.f32 0.6931472, %v1962_v12  ;;  %v1257_v30 = vmul.f32 %v2679_v53, %v1256_v31 }
 0x343   : > { %v1966_v2 = vpop.eup %1965  ;;  %v1242_v29 = vsel %vm2747_vm9, %v1239_v3, %v1236_v33  ;;  %v1273_v51 = vmul.f32 -0.5, %v2701_v10  ;;  %v1279_v37 = vadd.f32 1.0, %v2719_v44  ;;  %v1343_v41 = vadd.f32 %v1327_v38, %v2478_v11 }
 0x344   : > { %v1328_v1 = vadd.f32 %v1224_v14, %v3071_v62  ;;  %v1486_v50 = vsub.f32 %v1406_v20, %v1441_v32  ;;  %v3072_v15 = vmax.f32 %v2538_v55, 0.0  ;;  %v3073_v5 = vmax.f32 %v2514_v63, 0.0  ;;  %v1968_v31 = vpop.eup %1967 }
 0x345   : > { %v1357_v40 = vmul.f32 2.0, %v1341_v47  ;;  %v1251_v18 = vsel %vm2760_vm10, %v1248_v57, %v1245_v48  ;;  %v1265_v3 = vadd.f32 1.0, %v1264_v45  ;;  %v1267_v53 = vand.u32 2147483647, %v2688_v0 }
 0x346   : > { %v1329_v23 = vadd.f32 %v1233_v8, %v3072_v15  ;;  %v1330_v14 = vadd.f32 %v1242_v29, %v3073_v5  ;;  %v1404_v12 = vsub.f32 %v1356_v27, %v2533_v24  ;;  %v1344_v33 = vadd.f32 %v1328_v1, %v2509_v36  ;;  %v1445_v24 = vpop.permute.xlu0 %1444 }
 0x347   : > { %v3074_v38 = vmax.f32 %v2521_v4, 0.0  ;;  %v1254_v8 = vmul.f32 0.6931472, %v1966_v2  ;;  %v1263_v20 = vmul.f32 0.6931472, %v1968_v31  ;;  %v1507_v47 = vsel %vm1500_vm8, %v1486_v50, 0.0  ;;  %v1447_v50 = vpop.permute.xlu1 %1446 }
 0x348   : > { %v1346_v63 = vadd.f32 %v1330_v14, %v2501_v60  ;;  %1971 = vlog2.f32 %v1279_v37  ;;  %v1359_v61 = vmul.f32 2.0, %v1343_v41  ;;  %v1345_v57 = vadd.f32 %v1329_v23, %v2527_v22  ;;  %1508 = vadd.xlane.f32.xlu0 %v1507_v47 }
 0x349   : > { %v1331_v55 = vadd.f32 %v1251_v18, %v3074_v38  ;;  %v1274_v62 = vadd.f32 1.0, %v1273_v51  ;;  %vm2798_vm11 = vcmp.lt.f32.partialorder %v1258_v49, 0.0004427343  ;;  %v1266_v4 = vmul.f32 %v2688_v0, %v1265_v3 }
 0x34a   : > { %vm2803_vm12 = vcmp.lt.f32.partialorder %v1267_v53, 0.0004427343  ;;  %v1276_v48 = vand.u32 2147483647, %v2701_v10  ;;  %v1484_v2 = vsub.f32 %v1404_v12, %v2741_v34  ;;  %v1405_v32 = vsub.f32 %v1357_v40, %v2542_v9  ;;  %v1970_v49 = vpop.eup %1969 }
 0x34b   : > { %v1347_v45 = vadd.f32 %v1331_v55, %v2506_v16  ;;  %v1260_v51 = vsel %vm2798_vm11, %v1257_v30, %v1254_v8  ;;  %v1360_v37 = vmul.f32 2.0, %v1344_v33  ;;  %v1362_v41 = vmul.f32 2.0, %v1346_v63  ;;  %v1449_v33 = vpop.permute.xlu0 %1448 }
 0x34c   : > { %v1269_v0 = vsel %vm2803_vm12, %v1266_v4, %v1263_v20  ;;  %v1288_v15 = vadd.f32 1.0, %v2725_v58  ;;  %v1407_v23 = vsub.f32 %v1359_v61, %v2549_v46  ;;  %v1361_v5 = vmul.f32 2.0, %v1345_v57  ;;  %v3083_v57 = vld [vmem:[#allocation7_spill] sm:$0xff] }
 0x34d   : > { %v1363_v29 = vmul.f32 2.0, %v1347_v45  ;;  %v1272_v14 = vmul.f32 0.6931472, %v1970_v49  ;;  %v1275_v34 = vmul.f32 %v2701_v10, %v1274_v62  ;;  %v3079_v9 = vmax.f32 %v2569_v28, 0.0 }
 0x34e   : > { %vm1277_vm13 = vcmp.lt.f32.partialorder %v1276_v48, 0.0004427343  ;;  %v1282_v30 = vmul.f32 -0.5, %v2719_v44  ;;  %1973 = vlog2.f32 %v1288_v15  ;;  %v2821_v18 = vmul.f32 0.5, %v2596_v35 }
 0x34f   : > { %v1332_v40 = vadd.f32 %v1260_v51, %v3079_v9  ;;  %v1411_v3 = vsub.f32 %v1363_v29, %v2601_v25  ;;  %v3080_v53 = vmax.f32 %v2585_v42, 0.0  ;;  %v1278_v46 = vsel %vm1277_vm13, %v1275_v34, %v1272_v14  ;;  %v1451_v25 = vpop.permute.xlu1 %1450  ;;  %v1453_v51 = vpop.permute.xlu0 %1452 }
 0x350   : > { %v1408_v12 = vsub.f32 %v1360_v37, %v2551_v6  ;;  %v1410_v10 = vsub.f32 %v1362_v41, %v2599_v59  ;;  %v3081_v28 = vmax.f32 %v2563_v43, 0.0  ;;  %v1501_v55 = vsel %vm1500_vm8, %v1484_v2, 0.0  ;;  %v3082_v6 = vld [vmem:[#allocation5_spill] sm:$0xff] }
 0x351   : > { %v1333_v31 = vadd.f32 %v1269_v0, %v3080_v53  ;;  %v1485_v8 = vsub.f32 %v1405_v32, %v2756_v54  ;;  %v1487_v35 = vsub.f32 %v1407_v23, %v1443_v52  ;;  %v1409_v63 = vsub.f32 %v1361_v5, %v2574_v17  ;;  %1502 = vadd.xlane.f32.xlu0 %v1501_v55  ;;  %v3084_v52 = vld [vmem:[#allocation9_spill] sm:$0xff]  ;;  %v3087_v55 = vld [vmem:[#allocation16_spill] sm:$0xff] }
 0x352   : > { %v1334_v38 = vadd.f32 %v1278_v46, %v3081_v28  ;;  %v1297_v42 = vadd.f32 1.0, %v2739_v19  ;;  %v1348_v20 = vadd.f32 %v1332_v40, %v2558_v21  ;;  %v1283_v59 = vadd.f32 1.0, %v1282_v30  ;;  %v3085_v40 = vld [vmem:[#allocation14_spill] sm:$0xff] }
 0x353   : > { %v1285_v61 = vand.u32 2147483647, %v2719_v44  ;;  %v1491_v43 = vsub.f32 %v1411_v3, %v1451_v25  ;;  %v1349_v45 = vadd.f32 %v1333_v31, %v3083_v57  ;;  %v1306_v54 = vadd.f32 1.0, %v2754_v7  ;;  %v2013_v3 = vld [vmem:[%s2224_s25 + $0x60] sm:$0xff]  ;;  %v2014_v31 = vld [vmem:[%s2224_s25 + $0x68] sm:$0xff] }
 0x354   : > { %v1350_v47 = vadd.f32 %v1334_v38, %v3082_v6  ;;  %1975 = vlog2.f32 %v1297_v42  ;;  %v1111_v62 = vmax.f32 %v3084_v52, 0.0  ;;  %v1488_v17 = vsub.f32 %v1408_v12, %v1445_v24  ;;  %v1455_v12 = vpop.permute.xlu1 %1454  ;;  %v3086_v28 = vld [vmem:[#allocation10_spill] sm:$0xff]  ;;  %v3089_v42 = vld [vmem:[#allocation17_spill] sm:$0xff] }
 0x355   : > { %v1490_v27 = vsub.f32 %v1410_v10, %v1449_v33  ;;  %v1291_v4 = vmul.f32 -0.5, %v2725_v58  ;;  %v1972_v1 = vpop.eup %1971  ;;  %1977 = vlog2.f32 %v1306_v54  ;;  %v1504_v2 = vsel %vm1500_vm8, %v1485_v8, 0.0  ;;  %v3088_v8 = vld [vmem:[#allocation6_spill] sm:$0xff] }
 0x356   : > { %v1366_v48 = vmul.f32 2.0, %v1350_v47  ;;  %v1510_v32 = vsel %vm1500_vm8, %v1487_v35, 0.0  ;;  %v1489_v29 = vsub.f32 %v1409_v63, %v1447_v50  ;;  %v1281_v49 = vmul.f32 0.6931472, %v1972_v1  ;;  %1505 = vadd.xlane.f32.xlu1 %v1504_v2 }
 0x357   : > { %v1284_v37 = vmul.f32 %v2719_v44, %v1283_v59  ;;  %vm1286_vm14 = vcmp.lt.f32.partialorder %v1285_v61, 0.0004427343  ;;  %1511 = vadd.xlane.f32.xlu0 %v1510_v32  ;;  %v1364_v24 = vmul.f32 2.0, %v1348_v20  ;;  %v1365_v41 = vmul.f32 2.0, %v1349_v45  ;;  %v1457_v20 = vpop.permute.xlu0 %1456 }
 0x358   : > { %v1315_v0 = vadd.f32 1.0, %v2772_v26  ;;  %v1522_v15 = vsel %vm1500_vm8, %v1491_v43, 0.0  ;;  %v1292_v5 = vadd.f32 1.0, %v1291_v4  ;;  %v1294_v14 = vand.u32 2147483647, %v2725_v58 }
 0x359   : > { %v1287_v23 = vsel %vm1286_vm14, %v1284_v37, %v1281_v49  ;;  %v1300_v50 = vmul.f32 -0.5, %v2739_v19  ;;  %v1414_v34 = vsub.f32 %v1366_v48, %v2821_v18  ;;  %v1519_v9 = vsel %vm1500_vm8, %v1490_v27, 0.0  ;;  %v2015_v48 = vld [vmem:[%s2224_s25 + $0x70] sm:$0xff] }
 0x35a   : > { %v1335_v44 = vadd.f32 %v1287_v23, %v1111_v62  ;;  %1979 = vlog2.f32 %v1315_v0  ;;  %v1399_v30 = vmul.f32 0.5, %v3085_v40  ;;  %v1384_v53 = vmul.f32 %v2013_v3, %v2013_v3  ;;  %1520 = vadd.xlane.f32.xlu1 %v1519_v9 }
 0x35b   : > { %v1385_v46 = vmul.f32 %v2014_v31, %v2014_v31  ;;  %v1309_v10 = vmul.f32 -0.5, %v2754_v7  ;;  %1523 = vadd.xlane.f32.xlu0 %v1522_v15  ;;  %v1974_v33 = vpop.eup %1973  ;;  %v1112_v38 = vmax.f32 %v3086_v28, 0.0  ;;  %v1412_v18 = vsub.f32 %v1364_v24, %v3087_v55  ;;  %v1459_v24 = vpop.permute.xlu1 %1458  ;;  %v3090_v15 = vld [vmem:[#allocation8_spill] sm:$0xff] }
 0x35c   : > { %v1351_v35 = vadd.f32 %v1335_v44, %v3088_v8  ;;  %v1516_v63 = vsel %vm1500_vm8, %v1489_v29, 0.0  ;;  %v1413_v25 = vsub.f32 %v1365_v41, %v3089_v42  ;;  %v1290_v47 = vmul.f32 0.6931472, %v1974_v33  ;;  %v1461_v42 = vpop.permute.xlu0 %1460 }
 0x35d   : > { %v1293_v59 = vmul.f32 %v2725_v58, %v1292_v5  ;;  %v1301_v61 = vadd.f32 1.0, %v1300_v50  ;;  %v1494_v43 = vsub.f32 %v1414_v34, %v1457_v20  ;;  %vm1295_vm15 = vcmp.lt.f32.partialorder %v1294_v14, 0.0004427343  ;;  %v3091_v34 = vld [vmem:[#allocation13_spill] sm:$0xff] }
 0x35e   : > { %v1367_v45 = vmul.f32 2.0, %v1351_v35  ;;  %v1513_v54 = vsel %vm1500_vm8, %v1488_v17, 0.0  ;;  %v1303_v62 = vand.u32 2147483647, %v2739_v19  ;;  %v1310_v27 = vadd.f32 1.0, %v1309_v10  ;;  %v2016_v35 = vld [vmem:[%s2224_s25 + $0x78] sm:$0xff] }
 0x35f   : > { %v1296_v52 = vsel %vm1295_vm15, %v1293_v59, %v1290_v47  ;;  %v1318_v4 = vmul.f32 -0.5, %v2772_v26  ;;  %1517 = vadd.xlane.f32.xlu0 %v1516_v63  ;;  %1514 = vadd.xlane.f32.xlu1 %v1513_v54  ;;  %v1400_v1 = vmul.f32 0.5, %v1384_v53  ;;  %v1386_v2 = vmul.f32 %v2015_v48, %v2015_v48  ;;  %v3092_v53 = vld [vmem:[#allocation15_spill] sm:$0xff] }
 0x360   : > { %v1415_v32 = vsub.f32 %v1367_v45, %v1399_v30  ;;  %v1336_v29 = vadd.f32 %v1296_v52, %v1112_v38  ;;  %v1492_v49 = vsub.f32 %v1412_v18, %v1453_v51  ;;  %v1493_v37 = vsub.f32 %v1413_v25, %v1455_v12  ;;  %v3093_v25 = vld [vmem:[#allocation11_spill] sm:$0xff] }
 0x361   : > { %v1976_v58 = vpop.eup %1975  ;;  %v1302_v41 = vmul.f32 %v2739_v19, %v1301_v61  ;;  %v1312_v17 = vand.u32 2147483647, %v2754_v7  ;;  %v1531_v14 = vsel %vm1500_vm8, %v1494_v43, 0.0  ;;  %v1113_v44 = vmax.f32 %v3091_v34, 0.0  ;;  %v3094_v54 = vld [vmem:[#allocation19_spill] sm:$0xff] }
 0x362   : > { %v1495_v0 = vsub.f32 %v1415_v32, %v1459_v24  ;;  %v1352_v23 = vadd.f32 %v1336_v29, %v3090_v15  ;;  %v1299_v5 = vmul.f32 0.6931472, %v1976_v58  ;;  %v1978_v50 = vpop.eup %1977  ;;  %vm1304_vm0 = vcmp.lt.f32.partialorder %v1303_v62, 0.0004427343  ;;  %v1463_v58 = vpop.permute.xlu1 %1462 }
 0x363   : > { %v1311_v9 = vmul.f32 %v2754_v7, %v1310_v27  ;;  %v1319_v40 = vadd.f32 1.0, %v1318_v4  ;;  %1532 = vadd.xlane.f32.xlu1 %v1531_v14  ;;  %v1308_v19 = vmul.f32 0.6931472, %v1978_v50  ;;  %v1114_v31 = vmax.f32 %v3092_v53, 0.0  ;;  %v3095_v27 = vld [vmem:[#allocation12_spill] sm:$0xff] }
 0x364   : > { %v1368_v51 = vmul.f32 2.0, %v1352_v23  ;;  %v1305_v30 = vsel %vm1304_vm0, %v1302_v41, %v1299_v5  ;;  %v1534_v3 = vsel %vm1500_vm8, %v1495_v0, 0.0  ;;  %vm1313_vm1 = vcmp.lt.f32.partialorder %v1312_v17, 0.0004427343  ;;  %v1465_v41 = vpop.permute.xlu0 %1464 }
 0x365   : > { %v1337_v12 = vadd.f32 %v1305_v30, %v1113_v44  ;;  %v1321_v10 = vand.u32 2147483647, %v2772_v26  ;;  %1535 = vadd.xlane.f32.xlu0 %v1534_v3  ;;  %v1314_v28 = vsel %vm1313_vm1, %v1311_v9, %v1308_v19  ;;  %v1528_v38 = vsel %vm1500_vm8, %v1493_v37, 0.0 }
 0x366   : > { %v1416_v33 = vsub.f32 %v1368_v51, %v1400_v1  ;;  %v1525_v7 = vsel %vm1500_vm8, %v1492_v49, 0.0  ;;  %v1401_v18 = vmul.f32 0.5, %v1385_v46  ;;  %v1387_v63 = vmul.f32 %v2016_v35, %v2016_v35  ;;  %v1467_v50 = vpop.permute.xlu1 %1466 }
 0x367   : > { %v1980_v55 = vpop.eup %1979  ;;  %v1353_v20 = vadd.f32 %v1337_v12, %v3093_v25  ;;  %v1338_v47 = vadd.f32 %v1314_v28, %v1114_v31  ;;  %1526 = vadd.xlane.f32.xlu1 %v1525_v7  ;;  %v1402_v59 = vmul.f32 0.5, %v1386_v2  ;;  %v1320_v45 = vmul.f32 %v2772_v26, %v1319_v40  ;;  %v3096_v26 = vld [vmem:[#allocation18_spill] sm:$0xff] }
 0x368   : > { %v1496_v61 = vsub.f32 %v1416_v33, %v1461_v42  ;;  %v1317_v43 = vmul.f32 0.6931472, %v1980_v55  ;;  %v1115_v52 = vmax.f32 %v3094_v54, 0.0  ;;  %vm1322_vm2 = vcmp.lt.f32.partialorder %v1321_v10, 0.0004427343 }
 0x369   : > { %v1369_v62 = vmul.f32 2.0, %v1353_v20  ;;  %v1354_v4 = vadd.f32 %v1338_v47, %v3095_v27  ;;  %1529 = vadd.xlane.f32.xlu0 %v1528_v38  ;;  %v1403_v2 = vmul.f32 0.5, %v1387_v63  ;;  %1981 = vtanh.f32 %v2475_v56 }
 0x36a   : > { %v1323_v46 = vsel %vm1322_vm2, %v1320_v45, %v1317_v43  ;;  %v1537_v1 = vsel %vm1500_vm8, %v1496_v61, 0.0  ;;  %1983 = vtanh.f32 %v2481_v13  ;;  %vm1581_vm3 = vcmask 72704  }
 0x36b   : > { %v1417_v48 = vsub.f32 %v1369_v62, %v1401_v18  ;;  %v1370_v32 = vmul.f32 2.0, %v1354_v4  ;;  %v1339_v29 = vadd.f32 %v1323_v46, %v1115_v52  ;;  %1538 = vadd.xlane.f32.xlu1 %v1537_v1  ;;  %1985 = vtanh.f32 %v2478_v11 }
 0x36c   : > { %1987 = vtanh.f32 %v2494_v39 }
 0x36d   : > { %v1497_v49 = vsub.f32 %v1417_v48, %v1463_v58  ;;  %v1418_v37 = vsub.f32 %v1370_v32, %v1402_v59  ;;  %v1355_v24 = vadd.f32 %v1339_v29, %v3096_v26  ;;  %1989 = vtanh.f32 %v2501_v60 }
 0x36e   : > { %1991 = vtanh.f32 %v2506_v16 }
 0x36f   : > { %v1498_v17 = vsub.f32 %v1418_v37, %v1465_v41  ;;  %v1371_v0 = vmul.f32 2.0, %v1355_v24  ;;  %v1540_v23 = vsel %vm1500_vm8, %v1497_v49, 0.0  ;;  %1993 = vtanh.f32 %v2509_v36 }
 0x370   : > { %1541 = vadd.xlane.f32.xlu0 %v1540_v23  ;;  %1995 = vtanh.f32 %v2527_v22 }
 0x371   : > { %v1419_v5 = vsub.f32 %v1371_v0, %v1403_v2  ;;  %v1543_v14 = vsel %vm1500_vm8, %v1498_v17, 0.0  ;;  %1997 = vtanh.f32 %v3082_v6 }
 0x372   : > { %1544 = vadd.xlane.f32.xlu1 %v1543_v14  ;;  %1999 = vtanh.f32 %v3088_v8 }
 0x373   : > { %v1499_v34 = vsub.f32 %v1419_v5, %v1467_v50  ;;  %2001 = vtanh.f32 %v2558_v21 }
 0x374   : > { %2003 = vtanh.f32 %v3083_v57 }
 0x375   : > { %v1546_v44 = vsel %vm1500_vm8, %v1499_v34, 0.0  ;;  %2005 = vtanh.f32 %v3090_v15 }
 0x376   : > { %1547 = vadd.xlane.f32.xlu0 %v1546_v44  ;;  %v1982_v51 = vpop.eup %1981  ;;  %2007 = vtanh.f32 %v3093_v25 }
 0x377   : > { %v1984_v13 = vpop.eup %1983  ;;  %2009 = vtanh.f32 %v3095_v27 }
 0x378   : > { %v1986_v31 = vpop.eup %1985  ;;  %2011 = vtanh.f32 %v3096_v26 }
 0x379   : > { %v1988_v10 = vpop.eup %1987 }
 0x37a   : > { %v1990_v55 = vpop.eup %1989 }
 0x37b   : > { %v1992_v8 = vpop.eup %1991 }
 0x37c   : > { %v1994_v59 = vpop.eup %1993 }
 0x37d   : > { %v1996_v57 = vpop.eup %1995 }
 0x37e   : > { %v1998_v15 = vpop.eup %1997 }
 0x37f   : > { %v2000_v29 = vpop.eup %1999 }
 0x380   : > { %v2002_v24 = vpop.eup %2001 }
 0x381   : > { %v2004_v23 = vpop.eup %2003 }
 0x382   : > { %v2006_v34 = vpop.eup %2005 }
 0x3d1   : > { %v1509_v9 = vpop.xlane.xlu0 %1508 }
 0x3d2   : > { %v1551_v40 = vadd.f32 -18.441864, %v1509_v9 }
 0x3d4   : > { %v1567_v30 = vsel %vm1500_vm8, %v1982_v51, %v1551_v40 }
 0x3d5   : > { %v1584_v19 = vsel %vm1581_vm3, %v1567_v30, 0.0  ;;  %v2008_v30 = vpop.eup %2007 }
 0x3d6   : > { %1600 = vst [vmem:[%s2895_s20 + $0x10] sm:$0xff] %v1584_v19 }
 0x3da   : > { %v1503_v56 = vpop.xlane.xlu0 %1502 }
 0x3db   : > { %v1549_v11 = vadd.f32 -18.441864, %v1503_v56 }
 0x3dd   : > { %v1565_v39 = vsel %vm1500_vm8, %v1984_v13, %v1549_v11  ;;  %v2010_v13 = vpop.eup %2009 }
 0x3de   : > { %v1582_v3 = vsel %vm1581_vm3, %v1565_v39, 0.0 }
 0x3df   : > { %1598 = vst [vmem:[%s2895_s20] sm:$0xff] %v1582_v3  ;;  %v1506_v60 = vpop.xlane.xlu1 %1505 }
 0x3e0   : > { %v1512_v53 = vpop.xlane.xlu0 %1511  ;;  %v1550_v16 = vadd.f32 -18.441864, %v1506_v60 }
 0x3e1   : > { %v1552_v12 = vadd.f32 -18.441864, %v1512_v53 }
 0x3e2   : > { %v1566_v36 = vsel %vm1500_vm8, %v1988_v10, %v1550_v16  ;;  %v2012_v16 = vpop.eup %2011 }
 0x3e3   : > { %v1568_v22 = vsel %vm1500_vm8, %v1986_v31, %v1552_v12  ;;  %v1583_v33 = vsel %vm1581_vm3, %v1566_v36, 0.0  ;;  %v1521_v38 = vpop.xlane.xlu1 %1520 }
 0x3e4   : > { %v1585_v28 = vsel %vm1581_vm3, %v1568_v22, 0.0  ;;  %v1524_v7 = vpop.xlane.xlu0 %1523  ;;  %1599 = vst [vmem:[%s2895_s20 + $0x8] sm:$0xff] %v1583_v33  ;;  %v1555_v6 = vadd.f32 -18.441864, %v1521_v38 }
 0x3e5   : > { %1601 = vst [vmem:[%s2895_s20 + $0x18] sm:$0xff] %v1585_v28  ;;  %v1556_v18 = vadd.f32 -18.441864, %v1524_v7 }
 0x3e6   : > { %v1571_v35 = vsel %vm1500_vm8, %v1990_v55, %v1555_v6 }
 0x3e7   : > { %v1572_v63 = vsel %vm1500_vm8, %v1992_v8, %v1556_v18  ;;  %v1588_v42 = vsel %vm1581_vm3, %v1571_v35, 0.0 }
 0x3e8   : > { %v1589_v20 = vsel %vm1581_vm3, %v1572_v63, 0.0  ;;  %v1515_v47 = vpop.xlane.xlu1 %1514  ;;  %v1518_v21 = vpop.xlane.xlu0 %1517  ;;  %1604 = vst [vmem:[%s2895_s20 + $0x30] sm:$0xff] %v1588_v42 }
 0x3e9   : > { %1605 = vst [vmem:[%s2895_s20 + $0x38] sm:$0xff] %v1589_v20  ;;  %v1553_v61 = vadd.f32 -18.441864, %v1515_v47  ;;  %v1554_v43 = vadd.f32 -18.441864, %v1518_v21 }
 0x3eb   : > { %v1569_v45 = vsel %vm1500_vm8, %v1994_v59, %v1553_v61  ;;  %v1570_v54 = vsel %vm1500_vm8, %v1996_v57, %v1554_v43 }
 0x3ec   : > { %v1586_v52 = vsel %vm1581_vm3, %v1569_v45, 0.0  ;;  %v1587_v62 = vsel %vm1581_vm3, %v1570_v54, 0.0  ;;  %v1533_v4 = vpop.xlane.xlu1 %1532 }
 0x3ed   : > { %1602 = vst [vmem:[%s2895_s20 + $0x20] sm:$0xff] %v1586_v52  ;;  %1603 = vst [vmem:[%s2895_s20 + $0x28] sm:$0xff] %v1587_v62  ;;  %v1559_v46 = vadd.f32 -18.441864, %v1533_v4 }
 0x3ee   : > { %v1536_v1 = vpop.xlane.xlu0 %1535 }
 0x3ef   : > { %v1575_v48 = vsel %vm1500_vm8, %v1998_v15, %v1559_v46  ;;  %v1560_v32 = vadd.f32 -18.441864, %v1536_v1 }
 0x3f0   : > { %v1592_v58 = vsel %vm1581_vm3, %v1575_v48, 0.0  ;;  %v1527_v2 = vpop.xlane.xlu1 %1526 }
 0x3f1   : > { %1608 = vst [vmem:[%s2895_s20 + $0x50] sm:$0xff] %v1592_v58  ;;  %v1576_v49 = vsel %vm1500_vm8, %v2000_v29, %v1560_v32  ;;  %v1557_v37 = vadd.f32 -18.441864, %v1527_v2 }
 0x3f2   : > { %v1593_v41 = vsel %vm1581_vm3, %v1576_v49, 0.0  ;;  %v1530_v25 = vpop.xlane.xlu0 %1529 }
 0x3f3   : > { %1609 = vst [vmem:[%s2895_s20 + $0x58] sm:$0xff] %v1593_v41  ;;  %v1573_v17 = vsel %vm1500_vm8, %v2002_v24, %v1557_v37  ;;  %v1558_v0 = vadd.f32 -18.441864, %v1530_v25 }
 0x3f4   : > { %v1590_v27 = vsel %vm1581_vm3, %v1573_v17, 0.0  ;;  %v1539_v5 = vpop.xlane.xlu1 %1538 }
 0x3f5   : > { %1606 = vst [vmem:[%s2895_s20 + $0x40] sm:$0xff] %v1590_v27  ;;  %v1574_v14 = vsel %vm1500_vm8, %v2004_v23, %v1558_v0  ;;  %v1561_v50 = vadd.f32 -18.441864, %v1539_v5 }
 0x3f6   : > { %v1591_v44 = vsel %vm1581_vm3, %v1574_v14, 0.0 }
 0x3f7   : > { %1607 = vst [vmem:[%s2895_s20 + $0x48] sm:$0xff] %v1591_v44  ;;  %v1577_v9 = vsel %vm1500_vm8, %v2006_v34, %v1561_v50 }
 0x3f8   : > { %v1594_v40 = vsel %vm1581_vm3, %v1577_v9, 0.0 }
 0x3f9   : > { %1610 = vst [vmem:[%s2895_s20 + $0x60] sm:$0xff] %v1594_v40  ;;  %v1542_v26 = vpop.xlane.xlu0 %1541 }
 0x3fa   : > { %v1562_v51 = vadd.f32 -18.441864, %v1542_v26 }
 0x3fb   : > { %v1545_v19 = vpop.xlane.xlu1 %1544 }
 0x3fc   : > { %v1578_v56 = vsel %vm1500_vm8, %v2008_v30, %v1562_v51  ;;  %v1563_v11 = vadd.f32 -18.441864, %v1545_v19 }
 0x3fd   : > { %v1595_v39 = vsel %vm1581_vm3, %v1578_v56, 0.0 }
 0x3fe   : > { %1611 = vst [vmem:[%s2895_s20 + $0x68] sm:$0xff] %v1595_v39  ;;  %v1579_v3 = vsel %vm1500_vm8, %v2010_v13, %v1563_v11 }
 0x3ff   : > { %v1596_v60 = vsel %vm1581_vm3, %v1579_v3, 0.0  ;;  %v1548_v53 = vpop.xlane.xlu0 %1547 }
 0x400   : > { %1612 = vst [vmem:[%s2895_s20 + $0x70] sm:$0xff] %v1596_v60  ;;  %v1564_v31 = vadd.f32 -18.441864, %v1548_v53 }
 0x402   : > { %v1580_v12 = vsel %vm1500_vm8, %v2012_v16, %v1564_v31 }
 0x403   : > { %v1597_v10 = vsel %vm1581_vm3, %v1580_v12, 0.0 }
 0x404   : > { %1613 = vst [vmem:[%s2895_s20 + $0x78] sm:$0xff] %v1597_v10 }
 0x405   : > { %2030 = shalt.err (!%p2027_p3)
}
 0x406   : > { %s2031_s17 = scalar_lea.hbm %s2956_s19, 2048  ;;  %s2035_s21 = scalar_lea.hbm %s3014_s8, 4096 }
 0x407   : > { %p2032_p4 = scmp.ne.s32.totalorder %s2956_s19, %s2031_s17  ;;  %p2036_p9 = scmp.lt.s32.totalorder %s2956_s19, %s3014_s8 }
 0x408   : > { %p2037_p10 = scmp.lt.s32.totalorder %s2035_s21, %s2031_s17 }
 0x409   : > { %p2033_p7 = pnand %p2032_p4, %p2166_p5 }
 0x40a   : > { %p2038_p11 = por %p2037_p10, %p2036_p9 }
 0x40b   : > { %p2034_p8 = pneg %p2033_p7 }
 0x40d   : > { %p2039_p12 = pnand %p2038_p11, %p2034_p8 }
 0x40f   : > { %2042 = shalt.err (!%p2039_p12)
}
 0x410   : > { %s2082_s22 = smov 128  }
 0x411   : > { %1838 = dma.vmem_to_hbm [thread:$0]  (%p2166_p5), %s2959_s23, 2048, %s2956_s19, %s2965_s9, %s2082_s22, %s2082_s22, %s2079_s26  }
 0x412 PF: > { %p1844_p13 = scmp.ge.s32.totalorder %s2077_s30, 2  ;;  %s1643_s10 = sand.u32 1, %s2065_s27  }
 0x413   : > { %s1644_s12 = scalar_lea.sflag [#allocation3], %s1643_s10 }
 0x414   : > { %p1841_p0 = pnand %p1844_p13, %p2170_p6 }
 0x416   : > { %p1842_p1 = pneg %p1841_p0 }
 0x418   : > { %2060 = dma.done.wait (%p1842_p1), %s1644_s12, 2048  }
 0x419   : > { %2062 = vsyncadd (%p1842_p1), %s1644_s12, 4294965248  ;;  %p18_p2 = scmp.ge.s32.totalorder %s2153_s11, 4   ;;  %s3097_s27 = smov %s2069_s28 }
 0x41a   : > { %s3098_s28 = smov %s2073_s29  ;;  %s3099_s29 = smov %s2164_s14 }
 0x41b   : > { %s3100_s30 = smov %s2153_s11  ;;  %20 = sbr.rel (!%p18_p2) target bundleno = 3 (0x3), region = 90 }
 0x420   :  { %1649 = vsyncpa [#allocation3], 1 }
 0x421   :  { %1651 = vsyncpa [#allocation3 + $0x1], 1 }

</bundles_post_ra>
